<compile_context>
chip_gen: v7x
topology: tpu7x:2x2x1
jax: 0.10.0
libtpu: 0.0.40
codegen_flags: <defaults>
</compile_context>

<pallas_src>
import functools

import jax
import jax.numpy as jnp
import numpy as np
from jax.experimental import pallas as pl
from jax.experimental.pallas import tpu as pltpu

NEG_SLOPE = 0.01     # nn.LeakyReLU default
BN2D_EPS = 1e-4      # nn.BatchNorm2d(..., eps=0.0001) in the module
BN1D_EPS = 1e-5      # nn.BatchNorm1d default


# --------------------------------------------------------------------------
# In-kernel helpers (pure value math on VMEM-resident data)
# --------------------------------------------------------------------------
def _leaky(x):
    return jnp.where(x >= 0, x, NEG_SLOPE * x)


def _mxu(a, b):
    # LHS activation cast to bf16 at the MXU operand; weights are already bf16
    # (pre-cast at pack time); f32 accumulation.
    return jnp.dot(a.astype(jnp.bfloat16), b, preferred_element_type=jnp.float32)


def _lane_block_sum(v, nblk, blk):
    # (1, nblk*blk) -> (1, blk): sum the nblk lane blocks (reduce the spatial-w
    # positions that are folded into the lane axis).
    s = v[:, 0:blk]
    for k in range(1, nblk):
        s = s + v[:, k * blk:(k + 1) * blk]
    return s


def _lane_tile(v, n):
    # (1, blk) -> (1, n*blk): broadcast a per-channel row across the w blocks.
    return v if n == 1 else jnp.concatenate([v] * n, axis=1)


def _bn2d_rows(y, gamma, beta, eps, nblk, blk, count):
    # Training-mode BatchNorm2d on a row-layout activation:
    #   y rows = (b, h), lanes = (w, c) with w in [0, nblk), c in [0, blk).
    # Per-channel batch statistics over (b, h, w), biased variance.
    mean = _lane_block_sum(jnp.sum(y, axis=0, keepdims=True), nblk, blk) / count
    diff = y - _lane_tile(mean, nblk)
    var = _lane_block_sum(jnp.sum(diff * diff, axis=0, keepdims=True), nblk, blk) / count
    scale = gamma * jax.lax.rsqrt(var + eps)                    # (1, blk)
    return diff * _lane_tile(scale, nblk) + _lane_tile(beta, nblk)


def _bn1d_rows(y, gamma, beta, eps):
    # Training-mode BatchNorm1d: per-feature statistics over the batch rows.
    mean = jnp.mean(y, axis=0, keepdims=True)
    var = jnp.mean((y - mean) ** 2, axis=0, keepdims=True)
    return (y - mean) * jax.lax.rsqrt(var + eps) * gamma + beta


# --------------------------------------------------------------------------
# The single fused kernel.  All indices are static Python ints; all values are
# 2-D (matmul / elementwise / axis reductions / concats only) — no in-kernel
# reshapes or transposes.
# --------------------------------------------------------------------------
def _rotnet_kernel(dims, x_ref,
                   wb1_ref, g1_ref, be1_ref,
                   wb2_ref, g2_ref, be2_ref,
                   w3_ref, b3_ref,
                   fw1_ref, fg1_ref, fbe1_ref,
                   fw2_ref, fg2_ref, fbe2_ref,
                   fw3_ref, fb3_ref,
                   o_ref):
    B, H = dims["B"], dims["H"]
    C1, C2 = dims["C1"], dims["C2"]
    H1, W1 = dims["H1"], dims["W1"]
    Wp = dims["Wp"]
    H2, W2 = dims["H2"], dims["W2"]

    x = x_ref[...]                                            # (B*H, W*Cin) f32

    # ---- conv1: ONE banded matmul (B*H1, 3*W*Cin) x (3*W*Cin, W1*C1) ----
    # Only the kh shift needs a row gather (3*B contiguous, lane-dense slices);
    # the kw shift is folded into the banded weight matrix.
    xcat1 = jnp.concatenate(
        [jnp.concatenate([x[b * H + kh: b * H + kh + H1, :] for b in range(B)], axis=0)
         for kh in range(3)], axis=1)                         # (B*H1, 3*W*Cin)
    y1 = _mxu(xcat1, wb1_ref[...])                            # (B*H1, W1*C1) f32
    a1 = _leaky(_bn2d_rows(y1, g1_ref[...], be1_ref[...], BN2D_EPS,
                           W1, C1, B * H1 * W1))              # (B*H1, W1*C1)

    # ---- MaxPool2d(2, 2), floor mode, vectorized ----
    # W direction: max of even/odd C1-lane blocks.  H direction: max of each
    # row with its next row; pooled row (b, i) then lives at row b*H1 + 2*i.
    wmax = jnp.concatenate(
        [jnp.maximum(a1[:, (2 * j) * C1:(2 * j + 1) * C1],
                     a1[:, (2 * j + 1) * C1:(2 * j + 2) * C1]) for j in range(Wp)],
        axis=1)                                               # (B*H1, Wp*C1)
    hmax = jnp.maximum(wmax[:B * H1 - 1, :], wmax[1:, :])     # (B*H1-1, Wp*C1)

    def pooled_row(b, i):                                     # (1, Wp*C1)
        r = b * H1 + 2 * i
        return hmax[r:r + 1, :]

    # ---- conv2: ONE banded matmul (B*H2, 3*Wp*C1) x (3*Wp*C1, W2*C2) ----
    xcat2 = jnp.concatenate(
        [jnp.concatenate([pooled_row(b, kh + oh)
                          for b in range(B) for oh in range(H2)], axis=0)
         for kh in range(3)], axis=1)                         # (B*H2, 3*Wp*C1)
    y2 = _mxu(xcat2, wb2_ref[...])                            # (B*H2, W2*C2)
    a2 = _leaky(_bn2d_rows(y2, g2_ref[...], be2_ref[...], BN2D_EPS,
                           W2, C2, B * H2 * W2))              # (B*H2, W2*C2)

    # ---- conv3 (2x2 -> 1x1 spatial) + bias + tanh ----
    # Patch row b has lane order (kh, kw, c); rows (b,0),(b,1) of a2 already
    # carry the (kw, c) lane order, so one lane concat per image builds it.
    p3 = jnp.concatenate(
        [jnp.concatenate([a2[b * H2: b * H2 + 1, :],
                          a2[b * H2 + 1: b * H2 + 2, :]], axis=1)
         for b in range(B)], axis=0)                          # (B, 4*C2)
    h = jnp.tanh(_mxu(p3, w3_ref[...]) + b3_ref[...])         # (B, rep)

    # ---- classifier: Linear + BN1d + LeakyReLU (x2), Linear + Softmax ----
    z = _leaky(_bn1d_rows(_mxu(h, fw1_ref[...]), fg1_ref[...], fbe1_ref[...], BN1D_EPS))
    z = _leaky(_bn1d_rows(_mxu(z, fw2_ref[...]), fg2_ref[...], fbe2_ref[...], BN1D_EPS))
    logits = _mxu(z, fw3_ref[...]) + fb3_ref[...]
    logits = logits - jnp.max(logits, axis=1, keepdims=True)
    e = jnp.exp(logits)
    o_ref[...] = e / jnp.sum(e, axis=1, keepdims=True)        # exact normalization


_VMEM = pl.BlockSpec(memory_space=pltpu.MemorySpace.VMEM)


# --------------------------------------------------------------------------
# Parameter init (PyTorch layout) and one-time packing into kernel layout
# --------------------------------------------------------------------------
def init_params(key, in_ch=4, rep_dims=256, n_rots=4):
    ks = jax.random.split(key, 12)

    def w(k, shape, fan_in):
        return jax.random.normal(k, shape, jnp.float32) / jnp.sqrt(float(fan_in))

    def b(k, n):
        return jax.random.normal(k, (n,), jnp.float32) * 0.01

    return {
        "conv1_w": w(ks[0], (64, in_ch, 3, 3), in_ch * 9), "conv1_b": b(ks[1], 64),
        "bn1_g": jnp.ones((64,), jnp.float32), "bn1_b": jnp.zeros((64,), jnp.float32),
        "conv2_w": w(ks[2], (128, 64, 3, 3), 64 * 9), "conv2_b": b(ks[3], 128),
        "bn2_g": jnp.ones((128,), jnp.float32), "bn2_b": jnp.zeros((128,), jnp.float32),
        "conv3_w": w(ks[4], (rep_dims, 128, 2, 2), 128 * 4), "conv3_b": b(ks[5], rep_dims),
        "fc1_w": w(ks[6], (rep_dims // 2, rep_dims), rep_dims), "fc1_b": b(ks[7], rep_dims // 2),
        "bn3_g": jnp.ones((rep_dims // 2,), jnp.float32),
        "bn3_b": jnp.zeros((rep_dims // 2,), jnp.float32),
        "fc2_w": w(ks[8], (100, rep_dims // 2), rep_dims // 2), "fc2_b": b(ks[9], 100),
        "bn4_g": jnp.ones((100,), jnp.float32), "bn4_b": jnp.zeros((100,), jnp.float32),
        "fc3_w": w(ks[10], (n_rots, 100), 100), "fc3_b": b(ks[11], n_rots),
    }


def _banded_conv_mat(w, w_in, w_out):
    """Pack a (Cout, Cin, KH, KW) conv weight into a banded block-Toeplitz
    matmul weight M of shape (KH*w_in*Cin, w_out*Cout) so that with
        xcat[(b, oh), kh*w_in*Cin + wi*Cin + c] = x[b, oh+kh, wi, c]
    a single matmul xcat @ M gives y[(b, oh), ow*Cout + co], the valid stride-1
    cross-correlation (PyTorch Conv2d)."""
    w = np.asarray(w, np.float32)
    cout, cin, KH, KW = w.shape
    wt = np.transpose(w, (2, 3, 1, 0))                        # (KH, KW, Cin, Cout)
    m = np.zeros((KH * w_in * cin, w_out * cout), np.float32)
    for kh in range(KH):
        for kw in range(KW):
            for ow in range(w_out):
                wi = ow + kw
                r0 = (kh * w_in + wi) * cin
                m[r0:r0 + cin, ow * cout:(ow + 1) * cout] = wt[kh, kw]
    return m


def _conv_mat(w):
    """(Cout, Cin, KH, KW) -> (KH*KW*Cin, Cout), row order (kh, kw, c)."""
    w = np.asarray(w, np.float32)
    cout, cin, KH, KW = w.shape
    return np.transpose(w, (2, 3, 1, 0)).reshape(KH * KW * cin, cout)


def pack_params(p, in_hw=(10, 10)):
    """One-time re-layout into kernel layout (outside jit).  Matmul weights are
    pre-cast to bfloat16 (halves weight DMA, removes in-kernel cast sweeps);
    BN affine params and conv3/fc3 biases stay f32.  conv1/conv2/fc1/fc2 biases
    are intentionally dropped: the following BatchNorm's mean subtraction
    cancels them exactly."""
    H, W = in_hw
    H1, W1 = H - 2, W - 2
    Hp, Wp = H1 // 2, W1 // 2
    H2, W2 = Hp - 2, Wp - 2
    assert H2 == 2 and W2 == 2, "encoder output must be spatially 1x1 (use a 10x10 input)"

    bf16 = jnp.bfloat16
    row = lambda v: jnp.asarray(v, jnp.float32).reshape(1, -1)

    return {
        "wb1": jnp.asarray(_banded_conv_mat(p["conv1_w"], W, W1), bf16),
        "g1": row(p["bn1_g"]), "be1": row(p["bn1_b"]),
        "wb2": jnp.asarray(_banded_conv_mat(p["conv2_w"], Wp, W2), bf16),
        "g2": row(p["bn2_g"]), "be2": row(p["bn2_b"]),
        "w3": jnp.asarray(_conv_mat(p["conv3_w"]), bf16), "b3": row(p["conv3_b"]),
        "fw1": jnp.asarray(p["fc1_w"], jnp.float32).T.astype(bf16),
        "fg1": row(p["bn3_g"]), "fbe1": row(p["bn3_b"]),
        "fw2": jnp.asarray(p["fc2_w"], jnp.float32).T.astype(bf16),
        "fg2": row(p["bn4_g"]), "fbe2": row(p["bn4_b"]),
        "fw3": jnp.asarray(p["fc3_w"], jnp.float32).T.astype(bf16),
        "fb3": row(p["fc3_b"]),
    }


# --------------------------------------------------------------------------
# Forward: one fused pallas_call
# --------------------------------------------------------------------------
def rotnet_forward(packed, x_nchw):
    B, Cin, H, W = x_nchw.shape
    C1 = packed["g1"].shape[1]
    C2 = packed["g2"].shape[1]
    n_rots = packed["fw3"].shape[1]

    H1, W1 = H - 2, W - 2            # conv1 3x3 (valid)
    Hp, Wp = H1 // 2, W1 // 2        # MaxPool2d(2,2), floor mode
    H2, W2 = Hp - 2, Wp - 2          # conv2 3x3 (valid)
    assert H2 == 2 and W2 == 2, "encoder output must be spatially 1x1 (use a 10x10 input)"
    assert packed["wb1"].shape == (3 * W * Cin, W1 * C1), "packed weights mismatch input size"

    dims = dict(B=B, H=H, W=W, Cin=Cin, C1=C1, C2=C2,
                H1=H1, W1=W1, Hp=Hp, Wp=Wp, H2=H2, W2=W2)

    # NCHW -> row layout (B*H, W*Cin): one image row per sublane row, lane
    # index = w*Cin + c.  The only XLA-side layout op.
    x2d = jnp.transpose(x_nchw, (0, 2, 3, 1)).astype(jnp.float32).reshape(B * H, W * Cin)

    args = (x2d,
            packed["wb1"], packed["g1"], packed["be1"],
            packed["wb2"], packed["g2"], packed["be2"],
            packed["w3"], packed["b3"],
            packed["fw1"], packed["fg1"], packed["fbe1"],
            packed["fw2"], packed["fg2"], packed["fbe2"],
            packed["fw3"], packed["fb3"])

    return pl.pallas_call(
        functools.partial(_rotnet_kernel, dims),
        out_shape=jax.ShapeDtypeStruct((B, n_rots), jnp.float32),
        in_specs=[_VMEM] * len(args),
        out_specs=_VMEM,
        compiler_params=pltpu.CompilerParams(vmem_limit_bytes=32 * 1024 * 1024),
    )(*args)


if __name__ == "__main__":
    key = jax.random.PRNGKey(0)
    pkey, xkey = jax.random.split(key)
    params = init_params(pkey, in_ch=4, rep_dims=256, n_rots=4)
    packed = pack_params(params, in_hw=(10, 10))   # one-time weight re-layout, outside jit

    # 10x10 input: 3x3 conv -> 8x8 -> pool -> 4x4 -> 3x3 conv -> 2x2 -> 2x2 conv
    # -> 1x1, so the encoder's .view(B, -1) is (B, 256), matching Linear(256, .)
    x = jax.random.normal(xkey, (2, 4, 10, 10), jnp.float32)

    fwd = jax.jit(rotnet_forward)
    z = fwd(packed, x)
    jax.block_until_ready(z)
    assert z.shape == (2, 4)
    assert jnp.all(jnp.isfinite(z))
    assert jnp.allclose(jnp.sum(z, axis=1), 1.0, atol=1e-3)   # exact softmax rows
    print("KERNEL_OK")
</pallas_src>

<mosaic_0001>
module attributes {stable_mosaic.version = 11 : i64} {
  func.func @_rotnet_kernel(%arg0: memref<20x40xf32, #tpu.memory_space<vmem>>, %arg1: memref<120x512xbf16, #tpu.memory_space<vmem>>, %arg2: memref<1x64xf32, #tpu.memory_space<vmem>>, %arg3: memref<1x64xf32, #tpu.memory_space<vmem>>, %arg4: memref<768x256xbf16, #tpu.memory_space<vmem>>, %arg5: memref<1x128xf32, #tpu.memory_space<vmem>>, %arg6: memref<1x128xf32, #tpu.memory_space<vmem>>, %arg7: memref<512x256xbf16, #tpu.memory_space<vmem>>, %arg8: memref<1x256xf32, #tpu.memory_space<vmem>>, %arg9: memref<256x128xbf16, #tpu.memory_space<vmem>>, %arg10: memref<1x128xf32, #tpu.memory_space<vmem>>, %arg11: memref<1x128xf32, #tpu.memory_space<vmem>>, %arg12: memref<128x100xbf16, #tpu.memory_space<vmem>>, %arg13: memref<1x100xf32, #tpu.memory_space<vmem>>, %arg14: memref<1x100xf32, #tpu.memory_space<vmem>>, %arg15: memref<100x4xbf16, #tpu.memory_space<vmem>>, %arg16: memref<1x4xf32, #tpu.memory_space<vmem>>, %arg17: memref<2x4xf32, #tpu.memory_space<vmem>>) attributes {dimension_semantics = [], scalar_prefetch = 0 : i64, scratch_operands = 0 : i64, tpu.core_type = #tpu.core_type<tc>} {
    %c0 = arith.constant 0 : index
    %c0_0 = arith.constant 0 : index
    %0 = vector.load %arg0[%c0, %c0_0] : memref<20x40xf32, #tpu.memory_space<vmem>>, vector<20x40xf32>
    %1 = vector.extract_strided_slice %0 {offsets = [0, 0], sizes = [8, 40], strides = [1, 1]} : vector<20x40xf32> to vector<8x40xf32>
    %2 = vector.extract_strided_slice %0 {offsets = [10, 0], sizes = [8, 40], strides = [1, 1]} : vector<20x40xf32> to vector<8x40xf32>
    %3 = tpu.concatenate %1, %2 in 0 : vector<8x40xf32>, vector<8x40xf32> -> vector<16x40xf32>
    %4 = vector.extract_strided_slice %0 {offsets = [1, 0], sizes = [8, 40], strides = [1, 1]} : vector<20x40xf32> to vector<8x40xf32>
    %5 = vector.extract_strided_slice %0 {offsets = [11, 0], sizes = [8, 40], strides = [1, 1]} : vector<20x40xf32> to vector<8x40xf32>
    %6 = tpu.concatenate %4, %5 in 0 : vector<8x40xf32>, vector<8x40xf32> -> vector<16x40xf32>
    %7 = vector.extract_strided_slice %0 {offsets = [2, 0], sizes = [8, 40], strides = [1, 1]} : vector<20x40xf32> to vector<8x40xf32>
    %8 = vector.extract_strided_slice %0 {offsets = [12, 0], sizes = [8, 40], strides = [1, 1]} : vector<20x40xf32> to vector<8x40xf32>
    %9 = tpu.concatenate %7, %8 in 0 : vector<8x40xf32>, vector<8x40xf32> -> vector<16x40xf32>
    %10 = tpu.concatenate %3, %6, %9 in 1 : vector<16x40xf32>, vector<16x40xf32>, vector<16x40xf32> -> vector<16x120xf32>
    %c0_1 = arith.constant 0 : index
    %c0_2 = arith.constant 0 : index
    %11 = vector.load %arg1[%c0_1, %c0_2] : memref<120x512xbf16, #tpu.memory_space<vmem>>, vector<120x512xbf16>
    %12 = arith.truncf %10 : vector<16x120xf32> to vector<16x120xbf16>
    %cst = arith.constant dense<0.000000e+00> : vector<16x512xf32>
    %13 = tpu.matmul %12, %11, %cst {dimension_numbers = #tpu.dot_dimension_numbers<[1], [0], [0], [1], [0, 0, 1, 1], [], []>} : vector<16x120xbf16>, vector<120x512xbf16>, vector<16x512xf32> -> vector<16x512xf32>
    %c0_3 = arith.constant 0 : index
    %c0_4 = arith.constant 0 : index
    %14 = vector.load %arg2[%c0_3, %c0_4] : memref<1x64xf32, #tpu.memory_space<vmem>>, vector<1x64xf32>
    %c0_5 = arith.constant 0 : index
    %c0_6 = arith.constant 0 : index
    %15 = vector.load %arg3[%c0_5, %c0_6] : memref<1x64xf32, #tpu.memory_space<vmem>>, vector<1x64xf32>
    %cst_7 = arith.constant dense<0.000000e+00> : vector<512xf32>
    %16 = vector.multi_reduction <add>, %13, %cst_7 [0] : vector<16x512xf32> to vector<512xf32>
    %17 = vector.shape_cast %16 : vector<512xf32> to vector<1x512xf32>
    %18 = vector.extract_strided_slice %17 {offsets = [0, 0], sizes = [1, 64], strides = [1, 1]} : vector<1x512xf32> to vector<1x64xf32>
    %19 = vector.extract_strided_slice %17 {offsets = [0, 64], sizes = [1, 64], strides = [1, 1]} : vector<1x512xf32> to vector<1x64xf32>
    %20 = arith.addf %18, %19 : vector<1x64xf32>
    %21 = vector.extract_strided_slice %17 {offsets = [0, 128], sizes = [1, 64], strides = [1, 1]} : vector<1x512xf32> to vector<1x64xf32>
    %22 = arith.addf %20, %21 : vector<1x64xf32>
    %23 = vector.extract_strided_slice %17 {offsets = [0, 192], sizes = [1, 64], strides = [1, 1]} : vector<1x512xf32> to vector<1x64xf32>
    %24 = arith.addf %22, %23 : vector<1x64xf32>
    %25 = vector.extract_strided_slice %17 {offsets = [0, 256], sizes = [1, 64], strides = [1, 1]} : vector<1x512xf32> to vector<1x64xf32>
    %26 = arith.addf %24, %25 : vector<1x64xf32>
    %27 = vector.extract_strided_slice %17 {offsets = [0, 320], sizes = [1, 64], strides = [1, 1]} : vector<1x512xf32> to vector<1x64xf32>
    %28 = arith.addf %26, %27 : vector<1x64xf32>
    %29 = vector.extract_strided_slice %17 {offsets = [0, 384], sizes = [1, 64], strides = [1, 1]} : vector<1x512xf32> to vector<1x64xf32>
    %30 = arith.addf %28, %29 : vector<1x64xf32>
    %31 = vector.extract_strided_slice %17 {offsets = [0, 448], sizes = [1, 64], strides = [1, 1]} : vector<1x512xf32> to vector<1x64xf32>
    %32 = arith.addf %30, %31 : vector<1x64xf32>
    %cst_8 = arith.constant 1.280000e+02 : f32
    %33 = vector.broadcast %cst_8 : f32 to vector<1x64xf32>
    %34 = arith.divf %32, %33 : vector<1x64xf32>
    %35 = tpu.concatenate %34, %34, %34, %34, %34, %34, %34, %34 in 1 : vector<1x64xf32>, vector<1x64xf32>, vector<1x64xf32>, vector<1x64xf32>, vector<1x64xf32>, vector<1x64xf32>, vector<1x64xf32>, vector<1x64xf32> -> vector<1x512xf32>
    %36 = vector.broadcast %35 : vector<1x512xf32> to vector<16x512xf32>
    %37 = arith.subf %13, %36 : vector<16x512xf32>
    %38 = arith.mulf %37, %37 : vector<16x512xf32>
    %cst_9 = arith.constant dense<0.000000e+00> : vector<512xf32>
    %39 = vector.multi_reduction <add>, %38, %cst_9 [0] : vector<16x512xf32> to vector<512xf32>
    %40 = vector.shape_cast %39 : vector<512xf32> to vector<1x512xf32>
    %41 = vector.extract_strided_slice %40 {offsets = [0, 0], sizes = [1, 64], strides = [1, 1]} : vector<1x512xf32> to vector<1x64xf32>
    %42 = vector.extract_strided_slice %40 {offsets = [0, 64], sizes = [1, 64], strides = [1, 1]} : vector<1x512xf32> to vector<1x64xf32>
    %43 = arith.addf %41, %42 : vector<1x64xf32>
    %44 = vector.extract_strided_slice %40 {offsets = [0, 128], sizes = [1, 64], strides = [1, 1]} : vector<1x512xf32> to vector<1x64xf32>
    %45 = arith.addf %43, %44 : vector<1x64xf32>
    %46 = vector.extract_strided_slice %40 {offsets = [0, 192], sizes = [1, 64], strides = [1, 1]} : vector<1x512xf32> to vector<1x64xf32>
    %47 = arith.addf %45, %46 : vector<1x64xf32>
    %48 = vector.extract_strided_slice %40 {offsets = [0, 256], sizes = [1, 64], strides = [1, 1]} : vector<1x512xf32> to vector<1x64xf32>
    %49 = arith.addf %47, %48 : vector<1x64xf32>
    %50 = vector.extract_strided_slice %40 {offsets = [0, 320], sizes = [1, 64], strides = [1, 1]} : vector<1x512xf32> to vector<1x64xf32>
    %51 = arith.addf %49, %50 : vector<1x64xf32>
    %52 = vector.extract_strided_slice %40 {offsets = [0, 384], sizes = [1, 64], strides = [1, 1]} : vector<1x512xf32> to vector<1x64xf32>
    %53 = arith.addf %51, %52 : vector<1x64xf32>
    %54 = vector.extract_strided_slice %40 {offsets = [0, 448], sizes = [1, 64], strides = [1, 1]} : vector<1x512xf32> to vector<1x64xf32>
    %55 = arith.addf %53, %54 : vector<1x64xf32>
    %cst_10 = arith.constant 1.280000e+02 : f32
    %56 = vector.broadcast %cst_10 : f32 to vector<1x64xf32>
    %57 = arith.divf %55, %56 : vector<1x64xf32>
    %cst_11 = arith.constant 9.99999974E-5 : f32
    %58 = vector.broadcast %cst_11 : f32 to vector<1x64xf32>
    %59 = arith.addf %57, %58 : vector<1x64xf32>
    %60 = math.rsqrt %59 : vector<1x64xf32>
    %61 = arith.mulf %14, %60 : vector<1x64xf32>
    %62 = tpu.concatenate %61, %61, %61, %61, %61, %61, %61, %61 in 1 : vector<1x64xf32>, vector<1x64xf32>, vector<1x64xf32>, vector<1x64xf32>, vector<1x64xf32>, vector<1x64xf32>, vector<1x64xf32>, vector<1x64xf32> -> vector<1x512xf32>
    %63 = vector.broadcast %62 : vector<1x512xf32> to vector<16x512xf32>
    %64 = arith.mulf %37, %63 : vector<16x512xf32>
    %65 = tpu.concatenate %15, %15, %15, %15, %15, %15, %15, %15 in 1 : vector<1x64xf32>, vector<1x64xf32>, vector<1x64xf32>, vector<1x64xf32>, vector<1x64xf32>, vector<1x64xf32>, vector<1x64xf32>, vector<1x64xf32> -> vector<1x512xf32>
    %66 = vector.broadcast %65 : vector<1x512xf32> to vector<16x512xf32>
    %67 = arith.addf %64, %66 : vector<16x512xf32>
    %cst_12 = arith.constant 0.000000e+00 : f32
    %68 = vector.broadcast %cst_12 : f32 to vector<16x512xf32>
    %69 = arith.cmpf oge, %67, %68 : vector<16x512xf32>
    %cst_13 = arith.constant 0.00999999977 : f32
    %70 = vector.broadcast %cst_13 : f32 to vector<16x512xf32>
    %71 = arith.mulf %70, %67 : vector<16x512xf32>
    %72 = arith.select %69, %67, %71 : vector<16x512xi1>, vector<16x512xf32>
    %73 = vector.extract_strided_slice %72 {offsets = [0, 0], sizes = [16, 64], strides = [1, 1]} : vector<16x512xf32> to vector<16x64xf32>
    %74 = vector.extract_strided_slice %72 {offsets = [0, 64], sizes = [16, 64], strides = [1, 1]} : vector<16x512xf32> to vector<16x64xf32>
    %75 = arith.maximumf %73, %74 : vector<16x64xf32>
    %76 = vector.extract_strided_slice %72 {offsets = [0, 128], sizes = [16, 64], strides = [1, 1]} : vector<16x512xf32> to vector<16x64xf32>
    %77 = vector.extract_strided_slice %72 {offsets = [0, 192], sizes = [16, 64], strides = [1, 1]} : vector<16x512xf32> to vector<16x64xf32>
    %78 = arith.maximumf %76, %77 : vector<16x64xf32>
    %79 = vector.extract_strided_slice %72 {offsets = [0, 256], sizes = [16, 64], strides = [1, 1]} : vector<16x512xf32> to vector<16x64xf32>
    %80 = vector.extract_strided_slice %72 {offsets = [0, 320], sizes = [16, 64], strides = [1, 1]} : vector<16x512xf32> to vector<16x64xf32>
    %81 = arith.maximumf %79, %80 : vector<16x64xf32>
    %82 = vector.extract_strided_slice %72 {offsets = [0, 384], sizes = [16, 64], strides = [1, 1]} : vector<16x512xf32> to vector<16x64xf32>
    %83 = vector.extract_strided_slice %72 {offsets = [0, 448], sizes = [16, 64], strides = [1, 1]} : vector<16x512xf32> to vector<16x64xf32>
    %84 = arith.maximumf %82, %83 : vector<16x64xf32>
    %85 = tpu.concatenate %75, %78, %81, %84 in 1 : vector<16x64xf32>, vector<16x64xf32>, vector<16x64xf32>, vector<16x64xf32> -> vector<16x256xf32>
    %86 = vector.extract_strided_slice %85 {offsets = [0, 0], sizes = [15, 256], strides = [1, 1]} : vector<16x256xf32> to vector<15x256xf32>
    %87 = vector.extract_strided_slice %85 {offsets = [1, 0], sizes = [15, 256], strides = [1, 1]} : vector<16x256xf32> to vector<15x256xf32>
    %88 = arith.maximumf %86, %87 : vector<15x256xf32>
    %89 = vector.extract_strided_slice %88 {offsets = [0, 0], sizes = [1, 256], strides = [1, 1]} : vector<15x256xf32> to vector<1x256xf32>
    %90 = vector.extract_strided_slice %88 {offsets = [2, 0], sizes = [1, 256], strides = [1, 1]} : vector<15x256xf32> to vector<1x256xf32>
    %91 = vector.extract_strided_slice %88 {offsets = [8, 0], sizes = [1, 256], strides = [1, 1]} : vector<15x256xf32> to vector<1x256xf32>
    %92 = vector.extract_strided_slice %88 {offsets = [10, 0], sizes = [1, 256], strides = [1, 1]} : vector<15x256xf32> to vector<1x256xf32>
    %93 = tpu.concatenate %89, %90, %91, %92 in 0 : vector<1x256xf32>, vector<1x256xf32>, vector<1x256xf32>, vector<1x256xf32> -> vector<4x256xf32>
    %94 = vector.extract_strided_slice %88 {offsets = [2, 0], sizes = [1, 256], strides = [1, 1]} : vector<15x256xf32> to vector<1x256xf32>
    %95 = vector.extract_strided_slice %88 {offsets = [4, 0], sizes = [1, 256], strides = [1, 1]} : vector<15x256xf32> to vector<1x256xf32>
    %96 = vector.extract_strided_slice %88 {offsets = [10, 0], sizes = [1, 256], strides = [1, 1]} : vector<15x256xf32> to vector<1x256xf32>
    %97 = vector.extract_strided_slice %88 {offsets = [12, 0], sizes = [1, 256], strides = [1, 1]} : vector<15x256xf32> to vector<1x256xf32>
    %98 = tpu.concatenate %94, %95, %96, %97 in 0 : vector<1x256xf32>, vector<1x256xf32>, vector<1x256xf32>, vector<1x256xf32> -> vector<4x256xf32>
    %99 = vector.extract_strided_slice %88 {offsets = [4, 0], sizes = [1, 256], strides = [1, 1]} : vector<15x256xf32> to vector<1x256xf32>
    %100 = vector.extract_strided_slice %88 {offsets = [6, 0], sizes = [1, 256], strides = [1, 1]} : vector<15x256xf32> to vector<1x256xf32>
    %101 = vector.extract_strided_slice %88 {offsets = [12, 0], sizes = [1, 256], strides = [1, 1]} : vector<15x256xf32> to vector<1x256xf32>
    %102 = vector.extract_strided_slice %88 {offsets = [14, 0], sizes = [1, 256], strides = [1, 1]} : vector<15x256xf32> to vector<1x256xf32>
    %103 = tpu.concatenate %99, %100, %101, %102 in 0 : vector<1x256xf32>, vector<1x256xf32>, vector<1x256xf32>, vector<1x256xf32> -> vector<4x256xf32>
    %104 = tpu.concatenate %93, %98, %103 in 1 : vector<4x256xf32>, vector<4x256xf32>, vector<4x256xf32> -> vector<4x768xf32>
    %c0_14 = arith.constant 0 : index
    %c0_15 = arith.constant 0 : index
    %105 = vector.load %arg4[%c0_14, %c0_15] : memref<768x256xbf16, #tpu.memory_space<vmem>>, vector<768x256xbf16>
    %106 = arith.truncf %104 : vector<4x768xf32> to vector<4x768xbf16>
    %cst_16 = arith.constant dense<0.000000e+00> : vector<4x256xf32>
    %107 = tpu.matmul %106, %105, %cst_16 {dimension_numbers = #tpu.dot_dimension_numbers<[1], [0], [0], [1], [0, 0, 1, 1], [], []>} : vector<4x768xbf16>, vector<768x256xbf16>, vector<4x256xf32> -> vector<4x256xf32>
    %c0_17 = arith.constant 0 : index
    %c0_18 = arith.constant 0 : index
    %108 = vector.load %arg5[%c0_17, %c0_18] : memref<1x128xf32, #tpu.memory_space<vmem>>, vector<1x128xf32>
    %c0_19 = arith.constant 0 : index
    %c0_20 = arith.constant 0 : index
    %109 = vector.load %arg6[%c0_19, %c0_20] : memref<1x128xf32, #tpu.memory_space<vmem>>, vector<1x128xf32>
    %cst_21 = arith.constant dense<0.000000e+00> : vector<256xf32>
    %110 = vector.multi_reduction <add>, %107, %cst_21 [0] : vector<4x256xf32> to vector<256xf32>
    %111 = vector.shape_cast %110 : vector<256xf32> to vector<1x256xf32>
    %112 = vector.extract_strided_slice %111 {offsets = [0, 0], sizes = [1, 128], strides = [1, 1]} : vector<1x256xf32> to vector<1x128xf32>
    %113 = vector.extract_strided_slice %111 {offsets = [0, 128], sizes = [1, 128], strides = [1, 1]} : vector<1x256xf32> to vector<1x128xf32>
    %114 = arith.addf %112, %113 : vector<1x128xf32>
    %cst_22 = arith.constant 8.000000e+00 : f32
    %115 = vector.broadcast %cst_22 : f32 to vector<1x128xf32>
    %116 = arith.divf %114, %115 : vector<1x128xf32>
    %117 = tpu.concatenate %116, %116 in 1 : vector<1x128xf32>, vector<1x128xf32> -> vector<1x256xf32>
    %118 = vector.broadcast %117 : vector<1x256xf32> to vector<4x256xf32>
    %119 = arith.subf %107, %118 : vector<4x256xf32>
    %120 = arith.mulf %119, %119 : vector<4x256xf32>
    %cst_23 = arith.constant dense<0.000000e+00> : vector<256xf32>
    %121 = vector.multi_reduction <add>, %120, %cst_23 [0] : vector<4x256xf32> to vector<256xf32>
    %122 = vector.shape_cast %121 : vector<256xf32> to vector<1x256xf32>
    %123 = vector.extract_strided_slice %122 {offsets = [0, 0], sizes = [1, 128], strides = [1, 1]} : vector<1x256xf32> to vector<1x128xf32>
    %124 = vector.extract_strided_slice %122 {offsets = [0, 128], sizes = [1, 128], strides = [1, 1]} : vector<1x256xf32> to vector<1x128xf32>
    %125 = arith.addf %123, %124 : vector<1x128xf32>
    %cst_24 = arith.constant 8.000000e+00 : f32
    %126 = vector.broadcast %cst_24 : f32 to vector<1x128xf32>
    %127 = arith.divf %125, %126 : vector<1x128xf32>
    %cst_25 = arith.constant 9.99999974E-5 : f32
    %128 = vector.broadcast %cst_25 : f32 to vector<1x128xf32>
    %129 = arith.addf %127, %128 : vector<1x128xf32>
    %130 = math.rsqrt %129 : vector<1x128xf32>
    %131 = arith.mulf %108, %130 : vector<1x128xf32>
    %132 = tpu.concatenate %131, %131 in 1 : vector<1x128xf32>, vector<1x128xf32> -> vector<1x256xf32>
    %133 = vector.broadcast %132 : vector<1x256xf32> to vector<4x256xf32>
    %134 = arith.mulf %119, %133 : vector<4x256xf32>
    %135 = tpu.concatenate %109, %109 in 1 : vector<1x128xf32>, vector<1x128xf32> -> vector<1x256xf32>
    %136 = vector.broadcast %135 : vector<1x256xf32> to vector<4x256xf32>
    %137 = arith.addf %134, %136 : vector<4x256xf32>
    %cst_26 = arith.constant 0.000000e+00 : f32
    %138 = vector.broadcast %cst_26 : f32 to vector<4x256xf32>
    %139 = arith.cmpf oge, %137, %138 : vector<4x256xf32>
    %cst_27 = arith.constant 0.00999999977 : f32
    %140 = vector.broadcast %cst_27 : f32 to vector<4x256xf32>
    %141 = arith.mulf %140, %137 : vector<4x256xf32>
    %142 = arith.select %139, %137, %141 : vector<4x256xi1>, vector<4x256xf32>
    %143 = vector.extract_strided_slice %142 {offsets = [0, 0], sizes = [1, 256], strides = [1, 1]} : vector<4x256xf32> to vector<1x256xf32>
    %144 = vector.extract_strided_slice %142 {offsets = [1, 0], sizes = [1, 256], strides = [1, 1]} : vector<4x256xf32> to vector<1x256xf32>
    %145 = tpu.concatenate %143, %144 in 1 : vector<1x256xf32>, vector<1x256xf32> -> vector<1x512xf32>
    %146 = vector.extract_strided_slice %142 {offsets = [2, 0], sizes = [1, 256], strides = [1, 1]} : vector<4x256xf32> to vector<1x256xf32>
    %147 = vector.extract_strided_slice %142 {offsets = [3, 0], sizes = [1, 256], strides = [1, 1]} : vector<4x256xf32> to vector<1x256xf32>
    %148 = tpu.concatenate %146, %147 in 1 : vector<1x256xf32>, vector<1x256xf32> -> vector<1x512xf32>
    %149 = tpu.concatenate %145, %148 in 0 : vector<1x512xf32>, vector<1x512xf32> -> vector<2x512xf32>
    %c0_28 = arith.constant 0 : index
    %c0_29 = arith.constant 0 : index
    %150 = vector.load %arg7[%c0_28, %c0_29] : memref<512x256xbf16, #tpu.memory_space<vmem>>, vector<512x256xbf16>
    %151 = arith.truncf %149 : vector<2x512xf32> to vector<2x512xbf16>
    %cst_30 = arith.constant dense<0.000000e+00> : vector<2x256xf32>
    %152 = tpu.matmul %151, %150, %cst_30 {dimension_numbers = #tpu.dot_dimension_numbers<[1], [0], [0], [1], [0, 0, 1, 1], [], []>} : vector<2x512xbf16>, vector<512x256xbf16>, vector<2x256xf32> -> vector<2x256xf32>
    %c0_31 = arith.constant 0 : index
    %c0_32 = arith.constant 0 : index
    %153 = vector.load %arg8[%c0_31, %c0_32] : memref<1x256xf32, #tpu.memory_space<vmem>>, vector<1x256xf32>
    %154 = vector.broadcast %153 : vector<1x256xf32> to vector<2x256xf32>
    %155 = arith.addf %152, %154 : vector<2x256xf32>
    %156 = math.tanh %155 : vector<2x256xf32>
    %c0_33 = arith.constant 0 : index
    %c0_34 = arith.constant 0 : index
    %157 = vector.load %arg9[%c0_33, %c0_34] : memref<256x128xbf16, #tpu.memory_space<vmem>>, vector<256x128xbf16>
    %158 = arith.truncf %156 : vector<2x256xf32> to vector<2x256xbf16>
    %cst_35 = arith.constant dense<0.000000e+00> : vector<2x128xf32>
    %159 = tpu.matmul %158, %157, %cst_35 {dimension_numbers = #tpu.dot_dimension_numbers<[1], [0], [0], [1], [0, 0, 1, 1], [], []>} : vector<2x256xbf16>, vector<256x128xbf16>, vector<2x128xf32> -> vector<2x128xf32>
    %c0_36 = arith.constant 0 : index
    %c0_37 = arith.constant 0 : index
    %160 = vector.load %arg10[%c0_36, %c0_37] : memref<1x128xf32, #tpu.memory_space<vmem>>, vector<1x128xf32>
    %c0_38 = arith.constant 0 : index
    %c0_39 = arith.constant 0 : index
    %161 = vector.load %arg11[%c0_38, %c0_39] : memref<1x128xf32, #tpu.memory_space<vmem>>, vector<1x128xf32>
    %cst_40 = arith.constant dense<0.000000e+00> : vector<128xf32>
    %162 = vector.multi_reduction <add>, %159, %cst_40 [0] : vector<2x128xf32> to vector<128xf32>
    %163 = vector.shape_cast %162 : vector<128xf32> to vector<1x128xf32>
    %cst_41 = arith.constant 2.000000e+00 : f32
    %164 = vector.broadcast %cst_41 : f32 to vector<1x128xf32>
    %165 = arith.divf %163, %164 : vector<1x128xf32>
    %166 = vector.broadcast %165 : vector<1x128xf32> to vector<2x128xf32>
    %167 = arith.subf %159, %166 : vector<2x128xf32>
    %168 = arith.mulf %167, %167 : vector<2x128xf32>
    %cst_42 = arith.constant dense<0.000000e+00> : vector<128xf32>
    %169 = vector.multi_reduction <add>, %168, %cst_42 [0] : vector<2x128xf32> to vector<128xf32>
    %170 = vector.shape_cast %169 : vector<128xf32> to vector<1x128xf32>
    %cst_43 = arith.constant 2.000000e+00 : f32
    %171 = vector.broadcast %cst_43 : f32 to vector<1x128xf32>
    %172 = arith.divf %170, %171 : vector<1x128xf32>
    %173 = vector.broadcast %165 : vector<1x128xf32> to vector<2x128xf32>
    %174 = arith.subf %159, %173 : vector<2x128xf32>
    %cst_44 = arith.constant 9.99999974E-6 : f32
    %175 = vector.broadcast %cst_44 : f32 to vector<1x128xf32>
    %176 = arith.addf %172, %175 : vector<1x128xf32>
    %177 = math.rsqrt %176 : vector<1x128xf32>
    %178 = vector.broadcast %177 : vector<1x128xf32> to vector<2x128xf32>
    %179 = arith.mulf %174, %178 : vector<2x128xf32>
    %180 = vector.broadcast %160 : vector<1x128xf32> to vector<2x128xf32>
    %181 = arith.mulf %179, %180 : vector<2x128xf32>
    %182 = vector.broadcast %161 : vector<1x128xf32> to vector<2x128xf32>
    %183 = arith.addf %181, %182 : vector<2x128xf32>
    %cst_45 = arith.constant 0.000000e+00 : f32
    %184 = vector.broadcast %cst_45 : f32 to vector<2x128xf32>
    %185 = arith.cmpf oge, %183, %184 : vector<2x128xf32>
    %cst_46 = arith.constant 0.00999999977 : f32
    %186 = vector.broadcast %cst_46 : f32 to vector<2x128xf32>
    %187 = arith.mulf %186, %183 : vector<2x128xf32>
    %188 = arith.select %185, %183, %187 : vector<2x128xi1>, vector<2x128xf32>
    %c0_47 = arith.constant 0 : index
    %c0_48 = arith.constant 0 : index
    %189 = vector.load %arg12[%c0_47, %c0_48] : memref<128x100xbf16, #tpu.memory_space<vmem>>, vector<128x100xbf16>
    %190 = arith.truncf %188 : vector<2x128xf32> to vector<2x128xbf16>
    %cst_49 = arith.constant dense<0.000000e+00> : vector<2x100xf32>
    %191 = tpu.matmul %190, %189, %cst_49 {dimension_numbers = #tpu.dot_dimension_numbers<[1], [0], [0], [1], [0, 0, 1, 1], [], []>} : vector<2x128xbf16>, vector<128x100xbf16>, vector<2x100xf32> -> vector<2x100xf32>
    %c0_50 = arith.constant 0 : index
    %c0_51 = arith.constant 0 : index
    %192 = vector.load %arg13[%c0_50, %c0_51] : memref<1x100xf32, #tpu.memory_space<vmem>>, vector<1x100xf32>
    %c0_52 = arith.constant 0 : index
    %c0_53 = arith.constant 0 : index
    %193 = vector.load %arg14[%c0_52, %c0_53] : memref<1x100xf32, #tpu.memory_space<vmem>>, vector<1x100xf32>
    %cst_54 = arith.constant dense<0.000000e+00> : vector<100xf32>
    %194 = vector.multi_reduction <add>, %191, %cst_54 [0] : vector<2x100xf32> to vector<100xf32>
    %195 = vector.shape_cast %194 : vector<100xf32> to vector<1x100xf32>
    %cst_55 = arith.constant 2.000000e+00 : f32
    %196 = vector.broadcast %cst_55 : f32 to vector<1x100xf32>
    %197 = arith.divf %195, %196 : vector<1x100xf32>
    %198 = vector.broadcast %197 : vector<1x100xf32> to vector<2x100xf32>
    %199 = arith.subf %191, %198 : vector<2x100xf32>
    %200 = arith.mulf %199, %199 : vector<2x100xf32>
    %cst_56 = arith.constant dense<0.000000e+00> : vector<100xf32>
    %201 = vector.multi_reduction <add>, %200, %cst_56 [0] : vector<2x100xf32> to vector<100xf32>
    %202 = vector.shape_cast %201 : vector<100xf32> to vector<1x100xf32>
    %cst_57 = arith.constant 2.000000e+00 : f32
    %203 = vector.broadcast %cst_57 : f32 to vector<1x100xf32>
    %204 = arith.divf %202, %203 : vector<1x100xf32>
    %205 = vector.broadcast %197 : vector<1x100xf32> to vector<2x100xf32>
    %206 = arith.subf %191, %205 : vector<2x100xf32>
    %cst_58 = arith.constant 9.99999974E-6 : f32
    %207 = vector.broadcast %cst_58 : f32 to vector<1x100xf32>
    %208 = arith.addf %204, %207 : vector<1x100xf32>
    %209 = math.rsqrt %208 : vector<1x100xf32>
    %210 = vector.broadcast %209 : vector<1x100xf32> to vector<2x100xf32>
    %211 = arith.mulf %206, %210 : vector<2x100xf32>
    %212 = vector.broadcast %192 : vector<1x100xf32> to vector<2x100xf32>
    %213 = arith.mulf %211, %212 : vector<2x100xf32>
    %214 = vector.broadcast %193 : vector<1x100xf32> to vector<2x100xf32>
    %215 = arith.addf %213, %214 : vector<2x100xf32>
    %cst_59 = arith.constant 0.000000e+00 : f32
    %216 = vector.broadcast %cst_59 : f32 to vector<2x100xf32>
    %217 = arith.cmpf oge, %215, %216 : vector<2x100xf32>
    %cst_60 = arith.constant 0.00999999977 : f32
    %218 = vector.broadcast %cst_60 : f32 to vector<2x100xf32>
    %219 = arith.mulf %218, %215 : vector<2x100xf32>
    %220 = arith.select %217, %215, %219 : vector<2x100xi1>, vector<2x100xf32>
    %c0_61 = arith.constant 0 : index
    %c0_62 = arith.constant 0 : index
    %221 = vector.load %arg15[%c0_61, %c0_62] : memref<100x4xbf16, #tpu.memory_space<vmem>>, vector<100x4xbf16>
    %222 = arith.truncf %220 : vector<2x100xf32> to vector<2x100xbf16>
    %cst_63 = arith.constant dense<0.000000e+00> : vector<2x4xf32>
    %223 = tpu.matmul %222, %221, %cst_63 {dimension_numbers = #tpu.dot_dimension_numbers<[1], [0], [0], [1], [0, 0, 1, 1], [], []>} : vector<2x100xbf16>, vector<100x4xbf16>, vector<2x4xf32> -> vector<2x4xf32>
    %c0_64 = arith.constant 0 : index
    %c0_65 = arith.constant 0 : index
    %224 = vector.load %arg16[%c0_64, %c0_65] : memref<1x4xf32, #tpu.memory_space<vmem>>, vector<1x4xf32>
    %225 = vector.broadcast %224 : vector<1x4xf32> to vector<2x4xf32>
    %226 = arith.addf %223, %225 : vector<2x4xf32>
    %cst_66 = arith.constant dense<0xFF800000> : vector<2xf32>
    %227 = vector.multi_reduction <maximumf>, %226, %cst_66 [1] : vector<2x4xf32> to vector<2xf32>
    %228 = vector.shape_cast %227 : vector<2xf32> to vector<2x1xf32>
    %229 = vector.broadcast %228 : vector<2x1xf32> to vector<2x4xf32>
    %230 = arith.subf %226, %229 : vector<2x4xf32>
    %231 = math.exp %230 : vector<2x4xf32>
    %cst_67 = arith.constant dense<0.000000e+00> : vector<2xf32>
    %232 = vector.multi_reduction <add>, %231, %cst_67 [1] : vector<2x4xf32> to vector<2xf32>
    %233 = vector.shape_cast %232 : vector<2xf32> to vector<2x1xf32>
    %234 = vector.broadcast %233 : vector<2x1xf32> to vector<2x4xf32>
    %235 = arith.divf %231, %234 : vector<2x4xf32>
    %c0_68 = arith.constant 0 : index
    %c0_69 = arith.constant 0 : index
    %236 = vector.load %arg17[%c0_68, %c0_69] : memref<2x4xf32, #tpu.memory_space<vmem>>, vector<2x4xf32>
    tpu.vector_store %arg17[%c0_68, %c0_69], %235 {strides = array<i32>} : memref<2x4xf32, #tpu.memory_space<vmem>>, vector<2x4xf32>,
    return
  }
}

</mosaic_0001>

<bundles_post_ra>
// kernel: rotnet_forward.1
= control target key start
LH: loop header
LB: loop body
LE: loop exit
PB: predicated region body
PF: predicated region fallthrough
CT: control target
= control target key end

     0   :  { %s4398_s0 = inlined_call_operand.vmem [shape: f32[20,40], index: 0, kind: input, shape index: {}]   ;;  %s4399_s1 = inlined_call_operand.hbm [shape: bf16[120,512], index: 1, kind: input, shape index: {}]   ;;  %s4400_s2 = inlined_call_operand.hbm [shape: f32[1,64], index: 2, kind: input, shape index: {}]   ;;  %s4401_s3 = inlined_call_operand.hbm [shape: f32[1,64], index: 3, kind: input, shape index: {}]   ;;  %s4402_s4 = inlined_call_operand.hbm [shape: bf16[768,256], index: 4, kind: input, shape index: {}]   ;;  %s4403_s5 = inlined_call_operand.hbm [shape: f32[1,128], index: 5, kind: input, shape index: {}]   ;;  %s4404_s6 = inlined_call_operand.hbm [shape: f32[1,128], index: 6, kind: input, shape index: {}]   ;;  %s4405_s7 = inlined_call_operand.vmem [shape: bf16[512,256], index: 7, kind: input, shape index: {}]   ;;  %s4406_s8 = inlined_call_operand.vmem [shape: f32[1,256], index: 8, kind: input, shape index: {}]   ;;  %s4407_s9 = inlined_call_operand.hbm [shape: bf16[256,128], index: 9, kind: input, shape index: {}]   ;;  %s4408_s10 = inlined_call_operand.hbm [shape: f32[1,128], index: 10, kind: input, shape index: {}]   ;;  %s4409_s11 = inlined_call_operand.hbm [shape: f32[1,128], index: 11, kind: input, shape index: {}]   ;;  %s4410_s12 = inlined_call_operand.vmem [shape: bf16[128,100], index: 12, kind: input, shape index: {}]   ;;  %s4411_s13 = inlined_call_operand.hbm [shape: f32[1,100], index: 13, kind: input, shape index: {}]   ;;  %s4412_s14 = inlined_call_operand.hbm [shape: f32[1,100], index: 14, kind: input, shape index: {}]   ;;  %s4413_s15 = inlined_call_operand.vmem [shape: bf16[100,4], index: 15, kind: input, shape index: {}]   ;;  %s4414_s16 = inlined_call_operand.hbm [shape: f32[1,4], index: 16, kind: input, shape index: {}]   ;;  %s4415_s17 = inlined_call_operand.hbm [shape: f32[2,4], index: 17, kind: output, shape index: {}]  }
   0x1   :  { %4418 = sst [smem:[#allocation31_spill]] %s4398_s0 }
   0x2   :  { %4419 = sst [smem:[#allocation32_spill]] %s4399_s1 }
   0x3   :  { %22 = vsyncpa [#allocation3], 0 }
   0x4   :  { %23 = vsyncpa [#allocation6], 0 }
   0x5   :  { %24 = vsyncpa [#allocation9], 0 }
   0x6   :  { %25 = vsyncpa [#allocation12], 0 }
   0x7   :  { %26 = vsyncpa [#allocation15], 0 }
   0x8   :  { %27 = vsyncpa [#allocation18], 0 }
   0x9   :  { %28 = vsyncpa [#allocation21], 0 }
   0xa   :  { %29 = vsyncpa [#allocation4], 0  ;;  %s3663_s24 = smov [#allocation5]   ;;  %s3664_s26 = smov [#allocation8]  }
   0xb   :  { %s50_s25 = sshll.u32 %s3663_s24, 4  ;;  %s69_s27 = sshll.u32 %s3664_s26, 4  ;;  %s51_s25 = int_to_ptr.vmem [resolvable:$true] %s50_s25  ;;  %s3777_s27 = int_to_ptr.vmem [resolvable:$true] %s69_s27 }
   0xc   :  { %s3361_s0 = scalar_lea.hbm %s4400_s2, 16 }
   0xd   :  { %p3362_p0 = scmp.ne.s32.totalorder %s4400_s2, %s3361_s0  ;;  %p3365_p1 = scmp.lt.u32.totalorder %s3361_s0, %s4400_s2 }
   0xf   :  { %p3367_p2 = pnand %p3365_p1, %p3362_p0 }
  0x11   :  { %3370 = shalt.err (!%p3367_p2)
}
  0x12   :  { %s3371_s20 = scalar_lea.vmem %s51_s25, 16  ;;  %s3375_s21 = scalar_lea.vmem %s51_s25, 32 }
  0x13   :  { %p3372_p3 = scmp.ne.s32.totalorder %s51_s25, %s3371_s20  ;;  %p3376_p4 = scmp.lt.s32.totalorder %s51_s25, %s51_s25 }
  0x14   :  { %p3377_p5 = scmp.lt.s32.totalorder %s3375_s21, %s3371_s20 }
  0x16   :  { %p3378_p6 = por %p3377_p5, %p3376_p4 }
  0x18   :  { %p3379_p7 = pnand %p3378_p6, %p3372_p3 }
  0x1a   :  { %3382 = shalt.err (!%p3379_p7)
}
  0x1b   :  { %53 = dma.hbm_to_vmem [thread:$0]  %s4400_s2, 16, %s51_s25, [#allocation6]  }
  0x1c   :  { %s3383_s28 = scalar_lea.hbm %s4402_s4, 12288 }
  0x1d   :  { %p3384_p8 = scmp.ne.s32.totalorder %s4402_s4, %s3383_s28  ;;  %p3387_p9 = scmp.lt.u32.totalorder %s3383_s28, %s4402_s4 }
  0x1f   :  { %p3389_p10 = pnand %p3387_p9, %p3384_p8 }
  0x21   :  { %3392 = shalt.err (!%p3389_p10)
}
  0x22   :  { %s3393_s19 = scalar_lea.vmem %s3777_s27, 12288  ;;  %p3398_p12 = scmp.lt.s32.totalorder %s3777_s27, %s3777_s27 }
  0x23   :  { %p3394_p11 = scmp.ne.s32.totalorder %s3777_s27, %s3393_s19  ;;  %p3399_p13 = scmp.lt.s32.totalorder %s3393_s19, %s3393_s19 }
  0x25   :  { %p3400_p0 = por %p3399_p13, %p3398_p12 }
  0x27   :  { %p3401_p1 = pnand %p3400_p0, %p3394_p11 }
  0x29   :  { %3404 = shalt.err (!%p3401_p1)
}
  0x2a   :  { %s3665_s2 = smov 128   ;;  %s3666_s25 = smov 8  }
  0x2b   :  { %75 = dma.hbm_to_vmem [thread:$0]  %s4402_s4, 12288, %s3777_s27, [#allocation9], %s3665_s2, %s3665_s2, %s3666_s25  }
  0x2c   :  { %s3667_s21 = smov [#allocation11]   ;;  %s3668_s23 = smov [#allocation14]  }
  0x2d   :  { %s92_s22 = sshll.u32 %s3667_s21, 4  ;;  %s118_s24 = sshll.u32 %s3668_s23, 4  ;;  %s93_s22 = int_to_ptr.vmem [resolvable:$true] %s92_s22  ;;  %s119_s24 = int_to_ptr.vmem [resolvable:$true] %s118_s24 }
  0x2e   :  { %s3405_s29 = scalar_lea.hbm %s4404_s6, 16 }
  0x2f   :  { %p3406_p2 = scmp.ne.s32.totalorder %s4404_s6, %s3405_s29  ;;  %p3409_p3 = scmp.lt.u32.totalorder %s3405_s29, %s4404_s6 }
  0x31   :  { %p3411_p4 = pnand %p3409_p3, %p3406_p2 }
  0x33   :  { %3414 = shalt.err (!%p3411_p4)
}
  0x34   :  { %s3415_s4 = scalar_lea.vmem %s93_s22, 16  ;;  %s3419_s27 = scalar_lea.vmem %s93_s22, 32 }
  0x35   :  { %p3416_p5 = scmp.ne.s32.totalorder %s93_s22, %s3415_s4  ;;  %p3420_p6 = scmp.lt.s32.totalorder %s93_s22, %s93_s22 }
  0x36   :  { %p3421_p7 = scmp.lt.s32.totalorder %s3419_s27, %s3415_s4 }
  0x38   :  { %p3422_p8 = por %p3421_p7, %p3420_p6 }
  0x3a   :  { %p3423_p9 = pnand %p3422_p8, %p3416_p5 }
  0x3c   :  { %3426 = shalt.err (!%p3423_p9)
}
  0x3d   :  { %95 = dma.hbm_to_vmem [thread:$0]  %s4404_s6, 16, %s93_s22, [#allocation12]  }
  0x3e   :  { %s3427_s21 = scalar_lea.hbm %s4408_s10, 16 }
  0x3f   :  { %p3428_p10 = scmp.ne.s32.totalorder %s4408_s10, %s3427_s21  ;;  %p3431_p11 = scmp.lt.u32.totalorder %s3427_s21, %s4408_s10 }
  0x41   :  { %p3433_p12 = pnand %p3431_p11, %p3428_p10 }
  0x43   :  { %3436 = shalt.err (!%p3433_p12)
}
  0x44   :  { %s3437_s0 = scalar_lea.vmem %s119_s24, 16  ;;  %s3441_s30 = scalar_lea.vmem %s119_s24, 32 }
  0x45   :  { %p3438_p13 = scmp.ne.s32.totalorder %s119_s24, %s3437_s0  ;;  %p3442_p0 = scmp.lt.s32.totalorder %s119_s24, %s119_s24 }
  0x46   :  { %p3443_p1 = scmp.lt.s32.totalorder %s3441_s30, %s3437_s0 }
  0x48   :  { %p3444_p2 = por %p3443_p1, %p3442_p0 }
  0x4a   :  { %p3445_p3 = pnand %p3444_p2, %p3438_p13 }
  0x4c   :  { %3448 = shalt.err (!%p3445_p3)
}
  0x4d   :  { %121 = dma.hbm_to_vmem [thread:$0]  %s4408_s10, 16, %s119_s24, [#allocation15]  }
  0x4e   :  { %s3669_s18 = smov [#allocation17]   ;;  %s3670_s4 = smov [#allocation2]  }
  0x4f   :  { %s140_s19 = sshll.u32 %s3669_s18, 4  ;;  %s37_s27 = sshll.u32 %s3670_s4, 4  ;;  %s141_s19 = int_to_ptr.vmem [resolvable:$true] %s140_s19  ;;  %s3832_s27 = int_to_ptr.vmem [resolvable:$true] %s37_s27 }
  0x50   :  { %s3449_s1 = scalar_lea.hbm %s4411_s13, 16 }
  0x51   :  { %p3450_p4 = scmp.ne.s32.totalorder %s4411_s13, %s3449_s1  ;;  %p3453_p5 = scmp.lt.u32.totalorder %s3449_s1, %s4411_s13 }
  0x53   :  { %p3455_p6 = pnand %p3453_p5, %p3450_p4 }
  0x55   :  { %3458 = shalt.err (!%p3455_p6)
}
  0x56   :  { %s3459_s10 = scalar_lea.vmem %s141_s19, 16  ;;  %s3463_s24 = scalar_lea.vmem %s141_s19, 32 }
  0x57   :  { %p3460_p7 = scmp.ne.s32.totalorder %s141_s19, %s3459_s10  ;;  %p3464_p8 = scmp.lt.s32.totalorder %s141_s19, %s141_s19 }
  0x58   :  { %p3465_p9 = scmp.lt.s32.totalorder %s3463_s24, %s3459_s10 }
  0x5a   :  { %p3466_p10 = por %p3465_p9, %p3464_p8 }
  0x5c   :  { %p3467_p11 = pnand %p3466_p10, %p3460_p7 }
  0x5e   :  { %3470 = shalt.err (!%p3467_p11)
}
  0x5f   :  { %143 = dma.hbm_to_vmem [thread:$0]  %s4411_s13, 16, %s141_s19, [#allocation18]  }
  0x60   :  { %s4420_s6 = sld [smem:[#allocation32_spill]] }
  0x66   :  { %s3471_s22 = scalar_lea.hbm %s4420_s6, 3840 }
  0x67   :  { %p3472_p12 = scmp.ne.s32.totalorder %s4420_s6, %s3471_s22  ;;  %p3475_p13 = scmp.lt.u32.totalorder %s3471_s22, %s4420_s6 }
  0x69   :  { %p3477_p0 = pnand %p3475_p13, %p3472_p12 }
  0x6b   :  { %3480 = shalt.err (!%p3477_p0)
}
  0x6c   :  { %s3481_s1 = scalar_lea.vmem %s3832_s27, 3840  ;;  %p3486_p2 = scmp.lt.s32.totalorder %s3832_s27, %s3832_s27 }
  0x6d   :  { %p3482_p1 = scmp.ne.s32.totalorder %s3832_s27, %s3481_s1  ;;  %p3487_p3 = scmp.lt.s32.totalorder %s3481_s1, %s3481_s1 }
  0x6f   :  { %p3488_p4 = por %p3487_p3, %p3486_p2 }
  0x71   :  { %p3489_p5 = pnand %p3488_p4, %p3482_p1 }
  0x73   :  { %3492 = shalt.err (!%p3489_p5)
}
  0x74   :  { %s3671_s13 = smov 256   ;;  %s3672_s19 = smov 16  }
  0x75   :  { %43 = dma.hbm_to_vmem [thread:$0]  %s4420_s6, 3840, %s3832_s27, [#allocation3], %s3671_s13, %s3671_s13, %s3672_s19  }
  0x76   :  { %s3673_s23 = smov [#allocation7]   ;;  %s3674_s10 = smov [#allocation10]  }
  0x77   :  { %s60_s26 = sshll.u32 %s3673_s23, 4  ;;  %s82_s24 = sshll.u32 %s3674_s10, 4  ;;  %s61_s26 = int_to_ptr.vmem [resolvable:$true] %s60_s26  ;;  %s83_s24 = int_to_ptr.vmem [resolvable:$true] %s82_s24 }
  0x78   :  { %s3493_s0 = scalar_lea.hbm %s4401_s3, 16 }
  0x79   :  { %p3494_p6 = scmp.ne.s32.totalorder %s4401_s3, %s3493_s0  ;;  %p3497_p7 = scmp.lt.u32.totalorder %s3493_s0, %s4401_s3 }
  0x7b   :  { %p3499_p8 = pnand %p3497_p7, %p3494_p6 }
  0x7d   :  { %3502 = shalt.err (!%p3499_p8)
}
  0x7e   :  { %s3503_s27 = scalar_lea.vmem %s61_s26, 16  ;;  %s3507_s6 = scalar_lea.vmem %s61_s26, 32 }
  0x7f   :  { %p3504_p9 = scmp.ne.s32.totalorder %s61_s26, %s3503_s27  ;;  %p3508_p10 = scmp.lt.s32.totalorder %s61_s26, %s61_s26 }
  0x80   :  { %p3509_p11 = scmp.lt.s32.totalorder %s3507_s6, %s3503_s27 }
  0x82   :  { %p3510_p12 = por %p3509_p11, %p3508_p10 }
  0x84   :  { %p3511_p13 = pnand %p3510_p12, %p3504_p9 }
  0x86   :  { %3514 = shalt.err (!%p3511_p13)
}
  0x87   :  { %63 = dma.hbm_to_vmem [thread:$0]  %s4401_s3, 16, %s61_s26, [#allocation6]  }
  0x88   :  { %s3515_s19 = scalar_lea.hbm %s4403_s5, 16 }
  0x89   :  { %p3516_p0 = scmp.ne.s32.totalorder %s4403_s5, %s3515_s19  ;;  %p3519_p1 = scmp.lt.u32.totalorder %s3515_s19, %s4403_s5 }
  0x8b   :  { %p3521_p2 = pnand %p3519_p1, %p3516_p0 }
  0x8d   :  { %3524 = shalt.err (!%p3521_p2)
}
  0x8e   :  { %s3525_s28 = scalar_lea.vmem %s83_s24, 16  ;;  %s3529_s29 = scalar_lea.vmem %s83_s24, 32 }
  0x8f   :  { %p3526_p3 = scmp.ne.s32.totalorder %s83_s24, %s3525_s28  ;;  %p3530_p4 = scmp.lt.s32.totalorder %s83_s24, %s83_s24 }
  0x90   :  { %p3531_p5 = scmp.lt.s32.totalorder %s3529_s29, %s3525_s28 }
  0x92   :  { %p3532_p6 = por %p3531_p5, %p3530_p4 }
  0x94   :  { %p3533_p7 = pnand %p3532_p6, %p3526_p3 }
  0x96   :  { %3536 = shalt.err (!%p3533_p7)
}
  0x97   :  { %85 = dma.hbm_to_vmem [thread:$0]  %s4403_s5, 16, %s83_s24, [#allocation9]  }
  0x98   :  { %s3675_s0 = smov [#allocation13]   ;;  %s3537_s4 = scalar_lea.hbm %s4407_s9, 2048 }
  0x99   :  { %s105_s30 = sshll.u32 %s3675_s0, 4  ;;  %p3538_p8 = scmp.ne.s32.totalorder %s4407_s9, %s3537_s4  ;;  %s106_s30 = int_to_ptr.vmem [resolvable:$true] %s105_s30 }
  0x9a   :  { %p3541_p9 = scmp.lt.u32.totalorder %s3537_s4, %s4407_s9 }
  0x9c   :  { %p3543_p10 = pnand %p3541_p9, %p3538_p8 }
  0x9e   :  { %3546 = shalt.err (!%p3543_p10)
}
  0x9f   :  { %s3547_s1 = scalar_lea.vmem %s106_s30, 2048  ;;  %p3552_p12 = scmp.lt.s32.totalorder %s106_s30, %s106_s30 }
  0xa0   :  { %p3548_p11 = scmp.ne.s32.totalorder %s106_s30, %s3547_s1  ;;  %p3553_p13 = scmp.lt.s32.totalorder %s3547_s1, %s3547_s1 }
  0xa2   :  { %p3554_p0 = por %p3553_p13, %p3552_p12 }
  0xa4   :  { %p3555_p1 = pnand %p3554_p0, %p3548_p11 }
  0xa6   :  { %3558 = shalt.err (!%p3555_p1)
}
  0xa7   :  { %s3676_s5 = smov 64   ;;  %s3677_s24 = smov 4  }
  0xa8   :  { %111 = dma.hbm_to_vmem [thread:$0]  %s4407_s9, 2048, %s106_s30, [#allocation12], %s3676_s5, %s3676_s5, %s3677_s24  }
  0xa9   :  { %s3678_s20 = smov [#allocation16]   ;;  %s3679_s23 = smov [#allocation19]  }
  0xaa   :  { %s128_s21 = sshll.u32 %s3678_s20, 4  ;;  %s150_s10 = sshll.u32 %s3679_s23, 4  ;;  %s129_s21 = int_to_ptr.vmem [resolvable:$true] %s128_s21  ;;  %s151_s10 = int_to_ptr.vmem [resolvable:$true] %s150_s10 }
  0xab   :  { %s3559_s3 = scalar_lea.hbm %s4409_s11, 16 }
  0xac   :  { %p3560_p2 = scmp.ne.s32.totalorder %s4409_s11, %s3559_s3  ;;  %p3563_p3 = scmp.lt.u32.totalorder %s3559_s3, %s4409_s11 }
  0xae   :  { %p3565_p4 = pnand %p3563_p3, %p3560_p2 }
  0xb0   :  { %3568 = shalt.err (!%p3565_p4)
}
  0xb1   :  { %s3569_s9 = scalar_lea.vmem %s129_s21, 16  ;;  %s3573_s30 = scalar_lea.vmem %s129_s21, 32 }
  0xb2   :  { %p3570_p5 = scmp.ne.s32.totalorder %s129_s21, %s3569_s9  ;;  %p3574_p6 = scmp.lt.s32.totalorder %s129_s21, %s129_s21 }
  0xb3   :  { %p3575_p7 = scmp.lt.s32.totalorder %s3573_s30, %s3569_s9 }
  0xb5   :  { %p3576_p8 = por %p3575_p7, %p3574_p6 }
  0xb7   :  { %p3577_p9 = pnand %p3576_p8, %p3570_p5 }
  0xb9   :  { %3580 = shalt.err (!%p3577_p9)
}
  0xba   :  { %131 = dma.hbm_to_vmem [thread:$0]  %s4409_s11, 16, %s129_s21, [#allocation15]  }
  0xbb   :  { %s3581_s25 = scalar_lea.hbm %s4412_s14, 16 }
  0xbc   :  { %p3582_p10 = scmp.ne.s32.totalorder %s4412_s14, %s3581_s25  ;;  %p3585_p11 = scmp.lt.u32.totalorder %s3581_s25, %s4412_s14 }
  0xbe   :  { %p3587_p12 = pnand %p3585_p11, %p3582_p10 }
  0xc0   :  { %3590 = shalt.err (!%p3587_p12)
}
  0xc1   :  { %s3591_s20 = scalar_lea.vmem %s151_s10, 16  ;;  %s3595_s23 = scalar_lea.vmem %s151_s10, 32 }
  0xc2   :  { %p3592_p13 = scmp.ne.s32.totalorder %s151_s10, %s3591_s20  ;;  %p3596_p0 = scmp.lt.s32.totalorder %s151_s10, %s151_s10 }
  0xc3   :  { %p3597_p1 = scmp.lt.s32.totalorder %s3595_s23, %s3591_s20 }
  0xc5   :  { %p3598_p2 = por %p3597_p1, %p3596_p0 }
  0xc7   :  { %p3599_p3 = pnand %p3598_p2, %p3592_p13 }
  0xc9   :  { %3602 = shalt.err (!%p3599_p3)
}
  0xca   :  { %153 = dma.hbm_to_vmem [thread:$0]  %s4412_s14, 16, %s151_s10, [#allocation18]  }
  0xcb   :  { %s3680_s28 = smov [#allocation20]   ;;  %s3603_s0 = scalar_lea.hbm %s4414_s16, 16 }
  0xcc   :  { %s162_s29 = sshll.u32 %s3680_s28, 4  ;;  %p3604_p4 = scmp.ne.s32.totalorder %s4414_s16, %s3603_s0  ;;  %s163_s29 = int_to_ptr.vmem [resolvable:$true] %s162_s29 }
  0xcd   :  { %p3607_p5 = scmp.lt.u32.totalorder %s3603_s0, %s4414_s16 }
  0xcf   :  { %p3609_p6 = pnand %p3607_p5, %p3604_p4 }
  0xd1   :  { %3612 = shalt.err (!%p3609_p6)
}
  0xd2   :  { %s3613_s4 = scalar_lea.vmem %s163_s29, 16  ;;  %s3617_s14 = scalar_lea.vmem %s163_s29, 32 }
  0xd3   :  { %p3614_p7 = scmp.ne.s32.totalorder %s163_s29, %s3613_s4  ;;  %p3618_p8 = scmp.lt.s32.totalorder %s163_s29, %s163_s29 }
  0xd4   :  { %p3619_p9 = scmp.lt.s32.totalorder %s3617_s14, %s3613_s4 }
  0xd6   :  { %p3620_p10 = por %p3619_p9, %p3618_p8 }
  0xd8   :  { %p3621_p11 = pnand %p3620_p10, %p3614_p7 }
  0xda   :  { %3624 = shalt.err (!%p3621_p11)
}
  0xdb   :  { %165 = dma.hbm_to_vmem [thread:$0]  %s4414_s16, 16, %s163_s29, [#allocation21]  }
  0xdc   :  { %3647 = dma.done.wait [#allocation3], 3840  }
  0xdd   :  { %3648 = vsyncadd [#allocation3], 4294963456 }
  0xde   :  { %3649 = dma.done.wait [#allocation6], 32  }
  0xdf   :  { %3650 = vsyncadd [#allocation6], 4294967264 }
  0xe0   :  { %3651 = dma.done.wait [#allocation9], 12304  }
  0xe1   :  { %3652 = vsyncadd [#allocation9], 4294954992 }
  0xe2   :  { %3653 = dma.done.wait [#allocation12], 2064  }
  0xe3   :  { %3654 = vsyncadd [#allocation12], 4294965232 }
  0xe4   :  { %3655 = dma.done.wait [#allocation15], 32  }
  0xe5   :  { %3656 = vsyncadd [#allocation15], 4294967264 }
  0xe6   :  { %3657 = dma.done.wait [#allocation18], 32  }
  0xe7   :  { %3658 = vsyncadd [#allocation18], 4294967264 }
  0xe8   :  { %3659 = dma.done.wait [#allocation21], 16  }
  0xe9   :  { %3660 = vsyncadd [#allocation21], 4294967280  ;;  %vm214_vm0 = vcmask 1046528   ;;  %vm218_vm1 = vcmask 1044480   ;;  %s4421_s25 = sld [smem:[#allocation31_spill]]  ;;  %vm208_vm2 = vcmask 1045504  }
  0xea   :  { %vm224_vm3 = vcmask 1043456   ;;  %v3028_v11 = vld [vmem:[#allocation2 + $0x4] ss:$16 sps:$4 sm:$0xff]   ;;  %v3030_v14 = vld [vmem:[#allocation2 + $0xc] ss:$16 sps:$4 sm:$0xff]   ;;  %v3681_v20 = vmov 0  }
  0xeb   :  { %443 = vmatprep.subr.bf16.mxu0 %v3028_v11  ;;  %v3032_v17 = vld [vmem:[#allocation2] ss:$16 sps:$4 sm:$0xff]   ;;  %v3033_v18 = vld [vmem:[#allocation2 + $0x8] ss:$16 sps:$4 sm:$0xff]   ;;  %475 = vmatprep.mubr.bf16.mxu0 %v3681_v20  ;;  %v3034_v23 = vld [vmem:[#allocation2 + $0x24] ss:$16 sps:$4 sm:$0xff]  }
  0xec   :  { %486 = vmatprep.subr.bf16.mxu1 %v3030_v14  ;;  %518 = vmatprep.mubr.bf16.mxu1 %v3681_v20  ;;  %v3036_v24 = vld [vmem:[#allocation2 + $0x2c] ss:$16 sps:$4 sm:$0xff]   ;;  %v3038_v25 = vld [vmem:[#allocation2 + $0x20] ss:$16 sps:$4 sm:$0xff]   ;;  %s3682_s19 = smov 40   ;;  %s3683_s20 = smov 80  }
  0xed   :  { %444 = vmatpush1.bf16.msra.mxu0 %v3032_v17  ;;  %487 = vmatpush1.bf16.msra.mxu1 %v3033_v18  ;;  %v3039_v27 = vld [vmem:[#allocation2 + $0x28] ss:$16 sps:$4 sm:$0xff]   ;;  %v3040_v28 = vld [vmem:[#allocation2 + $0x44] ss:$16 sps:$4 sm:$0xff]   ;;  %v3042_v29 = vld [vmem:[#allocation2 + $0x4c] ss:$16 sps:$4 sm:$0xff]  }
  0xee   :  { %445 = vmatprep.subr.bf16.mxu0 %v3034_v23  ;;  %488 = vmatprep.subr.bf16.mxu1 %v3036_v24  ;;  %v3044_v30 = vld [vmem:[#allocation2 + $0x40] ss:$16 sps:$4 sm:$0xff]   ;;  %v3045_v31 = vld [vmem:[#allocation2 + $0x48] ss:$16 sps:$4 sm:$0xff]   ;;  %v3046_v32 = vld [vmem:[#allocation2 + $0x64] ss:$16 sps:$4 sm:$0xff]  }
  0xef   :  { %v3940_v0 = vld [vmem:[%s4421_s25] sm:$0xff]  ;;  %v204_v1 = vld [vmem:[%s4421_s25 + $0x8] sm:$0xff]  ;;  %v205_v2 = vld [vmem:[%s4421_s25 + $0x10] sm:$0xf]  ;;  %vm240_vm4 = vcmask 326656   ;;  %vm243_vm5 = vcmask 654336  }
  0xf0   :  { %v210_v3 = vrot.slane %v205_v2, 2  ;;  %v215_v4 = vrot.slane %v3940_v0, 1  ;;  %v216_v5 = vrot.slane %v204_v1, 1  ;;  %v219_v6 = vrot.slane %v204_v1, 3  ;;  %v3048_v33 = vld [vmem:[#allocation2 + $0x6c] ss:$16 sps:$4 sm:$0xff]  }
  0xf1   :  { %v220_v7 = vrot.slane %v205_v2, 3  ;;  %v209_v8 = vrot.slane %v204_v1, 2  ;;  %v222_v9 = vrot.slane %v3940_v0, 2  ;;  %v225_v10 = vrot.slane %v204_v1, 4  ;;  %446 = vmatpush1.bf16.msra.mxu0 %v3038_v25  ;;  %489 = vmatpush1.bf16.msra.mxu1 %v3039_v27  ;;  %v3050_v34 = vld [vmem:[#allocation2 + $0x60] ss:$16 sps:$4 sm:$0xff]  }
  0xf2   :  { %v217_v12 = vsel %vm214_vm0, %v215_v4, %v216_v5  ;;  %v226_v13 = vrot.slane %v205_v2, 4  ;;  %447 = vmatprep.subr.bf16.mxu0 %v3040_v28  ;;  %490 = vmatprep.subr.bf16.mxu1 %v3042_v29  ;;  %v3051_v35 = vld [vmem:[#allocation2 + $0x68] ss:$16 sps:$4 sm:$0xff]   ;;  %v3052_v36 = vld [vmem:[#allocation2 + $0x84] ss:$16 sps:$4 sm:$0xff]   ;;  %vm427_vm6 = vcmask 982016  }
  0xf3   :  { %v221_v15 = vsel %vm218_vm1, %v219_v6, %v220_v7  ;;  %v223_v16 = vsel %vm208_vm2, %v222_v9, %v209_v8  ;;  %v3954_v19 = vsel %vm208_vm2, %v209_v8, %v210_v3  ;;  %v3054_v37 = vld [vmem:[#allocation2 + $0x8c] ss:$16 sps:$4 sm:$0xff]   ;;  %v3056_v38 = vld [vmem:[#allocation2 + $0x80] ss:$16 sps:$4 sm:$0xff]   ;;  %v3057_v39 = vld [vmem:[#allocation2 + $0x88] ss:$16 sps:$4 sm:$0xff]  }
  0xf4   :  { %v2988_v21 = vpack.i.bf16 %v221_v15, %v217_v12  ;;  %v227_v22 = vsel %vm224_vm3, %v225_v10, %v226_v13  ;;  %v3058_v40 = vld [vmem:[#allocation2 + $0xa4] ss:$16 sps:$4 sm:$0xff]   ;;  %v3060_v41 = vld [vmem:[#allocation2 + $0xac] ss:$16 sps:$4 sm:$0xff]   ;;  %v3062_v42 = vld [vmem:[#allocation2 + $0xa0] ss:$16 sps:$4 sm:$0xff]  }
  0xf5   :  { %v2993_v26 = vpack.i.bf16 %v227_v22, %v223_v16  ;;  %448 = vmatpush1.bf16.msra.mxu0 %v3044_v30  ;;  %491 = vmatpush1.bf16.msra.mxu1 %v3045_v31  ;;  %v3063_v43 = vld [vmem:[#allocation2 + $0xa8] ss:$16 sps:$4 sm:$0xff]   ;;  %v3064_v44 = vld [vmem:[#allocation2 + $0xc4] ss:$16 sps:$4 sm:$0xff]   ;;  %v3066_v45 = vld [vmem:[#allocation2 + $0xcc] ss:$16 sps:$4 sm:$0xff]  }
  0xf6   :  { %2989 = vrot.lane.b32.xlu0 %v2988_v21, %s3682_s19  ;;  %449 = vmatprep.subr.bf16.mxu0 %v3046_v32  ;;  %v274_v46 = vld [vmem:[#allocation2 + $0xe0] sm:$0xff]  ;;  %v275_v47 = vld [vmem:[#allocation2 + $0xe8] sm:$0xff]  ;;  %vm588_vm7 = vcmask 523264   ;;  %vm825_vm1 = vcmask 1040384   ;;  %vm828_vm2 = vcmask 1041408  }
  0xf7   :  { %492 = vmatprep.subr.bf16.mxu1 %v3048_v33  ;;  %v3068_v48 = vld [vmem:[#allocation2 + $0xc0] ss:$16 sps:$4 sm:$0xff]   ;;  %v3069_v49 = vld [vmem:[#allocation2 + $0xc8] ss:$16 sps:$4 sm:$0xff]   ;;  %v2668_v50 = vcombine.high %v274_v46, %v274_v46  ;;  %v2670_v51 = vcombine.high %v275_v47, %v275_v47  ;;  %v2667_v52 = vcombine.low %v274_v46, %v274_v46  ;;  %v2669_v53 = vcombine.low %v275_v47, %v275_v47 }
  0xf9   :  { %450 = vmatpush1.bf16.msra.mxu0 %v3050_v34  ;;  %493 = vmatpush1.bf16.msra.mxu1 %v3051_v35  ;;  %v432_v54 = vsel %vm224_vm3, %v2667_v52, 0  ;;  %v438_v55 = vsel %vm224_vm3, %v2669_v53, 0 }
  0xfa   :  { %2994 = vrot.lane.b32.xlu0 %v2993_v26, %s3683_s20  ;;  %451 = vmatprep.subr.bf16.mxu0 %v3052_v36 }
  0xfb   :  { %494 = vmatprep.subr.bf16.mxu1 %v3054_v37 }
  0xfd   :  { %452 = vmatpush1.bf16.msra.mxu0 %v3056_v38  ;;  %495 = vmatpush1.bf16.msra.mxu1 %v3057_v39 }
  0xfe   :  { %453 = vmatprep.subr.bf16.mxu0 %v3058_v40  ;;  %496 = vmatprep.subr.bf16.mxu1 %v3060_v41 }
 0x101   :  { %454 = vmatpush1.bf16.msra.mxu0 %v3062_v42  ;;  %497 = vmatpush1.bf16.msra.mxu1 %v3063_v43 }
 0x102   :  { %455 = vmatprep.subr.bf16.mxu0 %v3064_v44  ;;  %498 = vmatprep.subr.bf16.mxu1 %v3066_v45 }
 0x105   :  { %456 = vmatpush1.bf16.msra.mxu0 %v3068_v48  ;;  %499 = vmatpush1.bf16.msra.mxu1 %v3069_v49 }
 0x106   :  { %2671 = vmatprep.subr.msk.bf16.mxu0 %vm224_vm3, %v2668_v50  ;;  %2673 = vmatprep.subr.msk.bf16.mxu1 %vm224_vm3, %v2670_v51  ;;  %v590_v51 = vlaneseq }
 0x108   :  { %v3971_v52 = vshrl.u32 %v590_v51, 7 }
 0x109   :  { %458 = vmatpush1.bf16.msra.mxu0 %v432_v54  ;;  %501 = vmatpush1.bf16.msra.mxu1 %v438_v55 }
 0x10a   :  { %v3974_v53 = vsub.s32 0, %v3971_v52 }
 0x168   :  { %v2990_v56 = vpop.permute.xlu0 %2989 }
 0x169   :  { %v2992_v57 = vunpack.i.h.bf16 %v2990_v56  ;;  %v2991_v58 = vunpack.i.l.bf16 %v2990_v56 }
 0x16b   :  { %v242_v62 = vsel %vm240_vm4, %v3954_v19, %v2992_v57  ;;  %v241_v63 = vsel %vm240_vm4, %v3940_v0, %v2991_v58  ;;  %vm831_vm4 = vcmask 1042432  }
 0x16c   :  { %v2995_v59 = vpop.permute.xlu0 %2994 }
 0x16d   :  { %v2997_v60 = vunpack.i.h.bf16 %v2995_v59  ;;  %v2996_v61 = vunpack.i.l.bf16 %v2995_v59 }
 0x16f   :  { %v244_v1 = vsel %vm243_vm5, %v241_v63, %v2996_v61  ;;  %v245_v2 = vsel %vm243_vm5, %v242_v62, %v2997_v60  ;;  %vm3685_vm5 = vmmov 0  }
 0x170   :  { %v276_v3 = vpack.c.bf16 %v245_v2, %v244_v1 }
 0x172   :  { %2672 = vmatmul.mubr.msk.bf16.vlgmr.msra.gmra.mrb[0].mxu0 %vm427_vm6, %v276_v3  ;;  %2674 = vmatmul.mubr.msk.bf16.vlgmr.msra.gmra.mrb[0].mxu1 %vm427_vm6, %v276_v3 }
 0x245   :  { %v477_v4 = vpop.f32.mrb[0].mxu0  ;;  %v3963_v5 = vpop.f32.mrb[0].mxu1 }
 0x246   :  { %v479_v6 = vpop.f32.mrb[1].mxu0  ;;  %v522_v7 = vpop.f32.mrb[1].mxu1 }
 0x247   :  { %v481_v8 = vpop.f32.mrb[2].mxu0  ;;  %v524_v9 = vpop.f32.mrb[2].mxu1 }
 0x248   :  { %v531_v10 = vadd.f32 %v481_v8, %v477_v4  ;;  %v545_v11 = vadd.f32 %v524_v9, %v3963_v5  ;;  %v483_v12 = vpop.f32.mrb[3].mxu0  ;;  %v526_v13 = vpop.f32.mrb[3].mxu1 }
 0x249   :  { %v538_v14 = vadd.f32 %v483_v12, %v479_v6  ;;  %v552_v0 = vadd.f32 %v526_v13, %v522_v7 }
 0x24a   :  { %v532_v15 = vrot.slane %v531_v10, 4  ;;  %v546_v16 = vrot.slane %v545_v11, 4 }
 0x24b   :  { %v539_v17 = vrot.slane %v538_v14, 4  ;;  %v553_v18 = vrot.slane %v552_v0, 4 }
 0x24c   :  { %v533_v19 = vadd.f32 %v532_v15, %v531_v10  ;;  %v547_v20 = vadd.f32 %v546_v16, %v545_v11 }
 0x24d   :  { %v540_v21 = vadd.f32 %v539_v17, %v538_v14  ;;  %v554_v22 = vadd.f32 %v553_v18, %v552_v0 }
 0x24e   :  { %v548_v23 = vrot.slane %v547_v20, 2  ;;  %v534_v24 = vrot.slane %v533_v19, 2 }
 0x24f   :  { %v541_v25 = vrot.slane %v540_v21, 2  ;;  %v555_v28 = vrot.slane %v554_v22, 2 }
 0x250   :  { %v549_v26 = vadd.f32 %v548_v23, %v547_v20  ;;  %v535_v27 = vadd.f32 %v534_v24, %v533_v19 }
 0x251   :  { %v542_v29 = vadd.f32 %v541_v25, %v540_v21  ;;  %v556_v35 = vadd.f32 %v555_v28, %v554_v22 }
 0x252   :  { %v550_v30 = vrot.slane %v549_v26, 1  ;;  %v536_v31 = vrot.slane %v535_v27, 1 }
 0x253   :  { %v543_v34 = vrot.slane %v542_v29, 1  ;;  %v557_v37 = vrot.slane %v556_v35, 1 }
 0x254   :  { %v551_v32 = vadd.f32 %v550_v30, %v549_v26  ;;  %v537_v33 = vadd.f32 %v536_v31, %v535_v27 }
 0x255   :  { %v544_v36 = vadd.f32 %v543_v34, %v542_v29  ;;  %v558_v38 = vadd.f32 %v557_v37, %v556_v35  ;;  %v530_v37 = vld [vmem:[#allocation7] sm:$0x1] }
 0x256   :  { %572 = vrot.lane.b32.xlu0 %v551_v32, %s3676_s5  ;;  %560 = vrot.lane.b32.xlu1 %v537_v33, %s3676_s5 }
 0x25a   :  { %566 = vrot.lane.b32.xlu1 %v544_v36, %s3676_s5 }
 0x25e   :  { %578 = vrot.lane.b32.xlu1 %v558_v38, %s3676_s5 }
 0x2c8   :  { %v561_v39 = vpop.permute.xlu1 %560  ;;  %v573_v45 = vpop.permute.xlu0 %572 }
 0x2c9   :  { %v563_v40 = vadd.f32 %v561_v39, %v537_v33 }
 0x2cb   :  { %v564_v41 = vadd.f32 %v563_v40, %v544_v36 }
 0x2cc   :  { %v567_v42 = vpop.permute.xlu1 %566 }
 0x2cd   :  { %v569_v43 = vadd.f32 %v567_v42, %v564_v41 }
 0x2cf   :  { %v570_v44 = vadd.f32 %v569_v43, %v551_v32 }
 0x2d0   :  { %v579_v48 = vpop.permute.xlu1 %578 }
 0x2d1   :  { %v575_v46 = vadd.f32 %v573_v45, %v570_v44 }
 0x2d3   :  { %v576_v47 = vadd.f32 %v575_v46, %v558_v38  ;;  %v690_v38 = vrot.slane %v530_v37, %v3974_v53 }
 0x2d5   :  { %v581_v49 = vadd.f32 %v579_v48, %v576_v47 }
 0x2d7   :  { %v583_v50 = vmul.f32 0.0078125, %v581_v49 }
 0x2d9   :  { %585 = vrot.lane.b32.xlu0 %v583_v50, %s3676_s5 }
 0x34b   :  { %v586_v54 = vpop.permute.xlu0 %585 }
 0x34c   :  { %v589_v55 = vsel %vm588_vm7, %v583_v50, %v586_v54  ;;  %v529_v54 = vld [vmem:[#allocation5] sm:$0x1] }
 0x34d   :  { %v593_v56 = vrot.slane %v589_v55, %v3974_v53 }
 0x34f   :  { %v3978_v57 = vsub.f32 %v479_v6, %v593_v56  ;;  %v3980_v58 = vsub.f32 %v483_v12, %v593_v56  ;;  %v3982_v59 = vsub.f32 %v477_v4, %v593_v56  ;;  %v3984_v60 = vsub.f32 %v481_v8, %v593_v56 }
 0x350   :  { %v3986_v61 = vsub.f32 %v522_v7, %v593_v56  ;;  %v3988_v62 = vsub.f32 %v526_v13, %v593_v56  ;;  %v3991_v63 = vsub.f32 %v3963_v5, %v593_v56  ;;  %v3993_v1 = vsub.f32 %v524_v9, %v593_v56 }
 0x351   :  { %v603_v2 = vmul.f32 %v3978_v57, %v3978_v57  ;;  %v607_v3 = vmul.f32 %v3980_v58, %v3980_v58  ;;  %v602_v4 = vmul.f32 %v3982_v59, %v3982_v59  ;;  %v606_v6 = vmul.f32 %v3984_v60, %v3984_v60 }
 0x352   :  { %v605_v7 = vmul.f32 %v3986_v61, %v3986_v61  ;;  %v609_v5 = vmul.f32 %v3988_v62, %v3988_v62  ;;  %v604_v8 = vmul.f32 %v3991_v63, %v3991_v63  ;;  %v608_v9 = vmul.f32 %v3993_v1, %v3993_v1 }
 0x353   :  { %v617_v10 = vadd.f32 %v607_v3, %v603_v2  ;;  %v610_v11 = vadd.f32 %v606_v6, %v602_v4 }
 0x354   :  { %v631_v12 = vadd.f32 %v609_v5, %v605_v7  ;;  %v624_v13 = vadd.f32 %v608_v9, %v604_v8 }
 0x355   :  { %v618_v14 = vrot.slane %v617_v10, 4  ;;  %v611_v0 = vrot.slane %v610_v11, 4 }
 0x356   :  { %v632_v15 = vrot.slane %v631_v12, 4  ;;  %v625_v16 = vrot.slane %v624_v13, 4 }
 0x357   :  { %v619_v17 = vadd.f32 %v618_v14, %v617_v10  ;;  %v612_v18 = vadd.f32 %v611_v0, %v610_v11 }
 0x358   :  { %v633_v19 = vadd.f32 %v632_v15, %v631_v12  ;;  %v626_v20 = vadd.f32 %v625_v16, %v624_v13 }
 0x359   :  { %v620_v21 = vrot.slane %v619_v17, 2  ;;  %v613_v22 = vrot.slane %v612_v18, 2 }
 0x35a   :  { %v634_v23 = vrot.slane %v633_v19, 2  ;;  %v627_v24 = vrot.slane %v626_v20, 2 }
 0x35b   :  { %v621_v25 = vadd.f32 %v620_v21, %v619_v17  ;;  %v614_v26 = vadd.f32 %v613_v22, %v612_v18  ;;  %v3074_v22 = vld [vmem:[#allocation8] ss:$8 sps:$4 sm:$0xff]  }
 0x35c   :  { %v635_v27 = vadd.f32 %v634_v23, %v633_v19  ;;  %v628_v28 = vadd.f32 %v627_v24, %v626_v20  ;;  %v3077_v24 = vld [vmem:[#allocation8 + $0x10] ss:$8 sps:$4 sm:$0xff]  }
 0x35d   :  { %v622_v29 = vrot.slane %v621_v25, 1  ;;  %v615_v30 = vrot.slane %v614_v26, 1 }
 0x35e   :  { %v636_v33 = vrot.slane %v635_v27, 1  ;;  %v629_v34 = vrot.slane %v628_v28, 1 }
 0x35f   :  { %v623_v31 = vadd.f32 %v622_v29, %v621_v25  ;;  %v616_v32 = vadd.f32 %v615_v30, %v614_v26  ;;  %v3079_v25 = vld [vmem:[#allocation8 + $0x14] ss:$8 sps:$4 sm:$0xff]   ;;  %v3082_v30 = vld [vmem:[#allocation8 + $0x24] ss:$8 sps:$4 sm:$0xff]  }
 0x360   :  { %v637_v35 = vadd.f32 %v636_v33, %v635_v27  ;;  %v630_v36 = vadd.f32 %v629_v34, %v628_v28 }
 0x361   :  { %645 = vrot.lane.b32.xlu0 %v623_v31, %s3676_s5  ;;  %639 = vrot.lane.b32.xlu1 %v616_v32, %s3676_s5 }
 0x365   :  { %657 = vrot.lane.b32.xlu0 %v637_v35, %s3676_s5  ;;  %651 = vrot.lane.b32.xlu1 %v630_v36, %s3676_s5 }
 0x369   :  { %691 = vrot.lane.b32.xlu0 %v690_v38, %s3676_s5 }
 0x3d3   :  { %v640_v39 = vpop.permute.xlu1 %639  ;;  %v646_v42 = vpop.permute.xlu0 %645 }
 0x3d4   :  { %v642_v40 = vadd.f32 %v640_v39, %v616_v32 }
 0x3d6   :  { %v643_v41 = vadd.f32 %v642_v40, %v623_v31 }
 0x3d7   :  { %v652_v45 = vpop.permute.xlu1 %651  ;;  %v658_v48 = vpop.permute.xlu0 %657 }
 0x3d8   :  { %v648_v43 = vadd.f32 %v646_v42, %v643_v41  ;;  %v3085_v41 = vld [vmem:[#allocation8 + $0x34] ss:$8 sps:$4 sm:$0xff]  }
 0x3da   :  { %v649_v44 = vadd.f32 %v648_v43, %v630_v36  ;;  %v3083_v43 = vld [vmem:[#allocation8 + $0x30] ss:$8 sps:$4 sm:$0xff]  }
 0x3db   :  { %v692_v3 = vpop.permute.xlu0 %691 }
 0x3dc   :  { %v654_v46 = vadd.f32 %v652_v45, %v649_v44  ;;  %v694_v4 = vsel %vm588_vm7, %v530_v37, %v692_v3  ;;  %v3080_v37 = vld [vmem:[#allocation8 + $0x20] ss:$8 sps:$4 sm:$0xff]   ;;  %v3088_v44 = vld [vmem:[#allocation8 + $0x44] ss:$8 sps:$4 sm:$0xff]  }
 0x3dd   :  { %v698_v8 = vrot.slane %v694_v4, %v3974_v53  ;;  %v3086_v45 = vld [vmem:[#allocation8 + $0x40] ss:$8 sps:$4 sm:$0xff]   ;;  %v3106_v3 = vld [vmem:[#allocation8 + $0xa4] ss:$8 sps:$4 sm:$0xff]  }
 0x3de   :  { %v655_v47 = vadd.f32 %v654_v46, %v637_v35  ;;  %v3091_v46 = vld [vmem:[#allocation8 + $0x54] ss:$8 sps:$4 sm:$0xff]   ;;  %v3104_v4 = vld [vmem:[#allocation8 + $0xa0] ss:$8 sps:$4 sm:$0xff]  }
 0x3e0   :  { %v660_v49 = vadd.f32 %v658_v48, %v655_v47  ;;  %v3089_v47 = vld [vmem:[#allocation8 + $0x50] ss:$8 sps:$4 sm:$0xff]   ;;  %v3094_v48 = vld [vmem:[#allocation8 + $0x64] ss:$8 sps:$4 sm:$0xff]  }
 0x3e2   :  { %v661_v50 = vmul.f32 0.0078125, %v660_v49  ;;  %v3092_v49 = vld [vmem:[#allocation8 + $0x60] ss:$8 sps:$4 sm:$0xff]  }
 0x3e4   :  { %v662_v51 = vadd.f32 0.0001, %v661_v50  ;;  %v3097_v50 = vld [vmem:[#allocation8 + $0x74] ss:$8 sps:$4 sm:$0xff]  }
 0x3e6   :  { %3345 = vrsqrt.f32 %v662_v51  ;;  %v3095_v51 = vld [vmem:[#allocation8 + $0x70] ss:$8 sps:$4 sm:$0xff]  }
 0x3f0   :  { %v3346_v55 = vpop.eup %3345 }
 0x3f1   :  { %v664_v56 = vmul.f32 %v3346_v55, %v529_v54  ;;  %v3100_v54 = vld [vmem:[#allocation8 + $0x84] ss:$8 sps:$4 sm:$0xff]   ;;  %v3098_v55 = vld [vmem:[#allocation8 + $0x80] ss:$8 sps:$4 sm:$0xff]  }
 0x3f3   :  { %v669_v2 = vrot.slane %v664_v56, %v3974_v53 }
 0x3f5   :  { %670 = vrot.lane.b32.xlu1 %v669_v2, %s3676_s5  ;;  %v3101_v2 = vld [vmem:[#allocation8 + $0x90] ss:$8 sps:$4 sm:$0xff]  }
 0x467   :  { %v671_v6 = vpop.permute.xlu1 %670 }
 0x468   :  { %v673_v7 = vsel %vm588_vm7, %v664_v56, %v671_v6  ;;  %v3103_v56 = vld [vmem:[#allocation8 + $0x94] ss:$8 sps:$4 sm:$0xff]  }
 0x469   :  { %v677_v5 = vrot.slane %v673_v7, %v3974_v53  ;;  %v3109_v6 = vld [vmem:[#allocation8 + $0xb4] ss:$8 sps:$4 sm:$0xff]   ;;  %v3107_v7 = vld [vmem:[#allocation8 + $0xb0] ss:$8 sps:$4 sm:$0xff]  }
 0x46b   :  { %v681_v9 = vmul.f32 %v677_v5, %v3986_v61  ;;  %v685_v10 = vmul.f32 %v677_v5, %v3988_v62  ;;  %v679_v11 = vmul.f32 %v677_v5, %v3978_v57  ;;  %v683_v12 = vmul.f32 %v677_v5, %v3980_v58  ;;  %v3076_v57 = vld [vmem:[#allocation8 + $0x4] ss:$8 sps:$4 sm:$0xff]  }
 0x46c   :  { %v680_v13 = vmul.f32 %v677_v5, %v3991_v63  ;;  %v684_v14 = vmul.f32 %v677_v5, %v3993_v1  ;;  %v678_v0 = vmul.f32 %v677_v5, %v3982_v59  ;;  %v682_v15 = vmul.f32 %v677_v5, %v3984_v60  ;;  %1456 = vmatprep.subr.bf16.mxu0 %v3076_v57  ;;  %v3112_v5 = vld [vmem:[#allocation8 + $0xc4] ss:$8 sps:$4 sm:$0xff]   ;;  %v3119_v57 = vld [vmem:[#allocation8 + $0xf0] ss:$8 sps:$4 sm:$0xff]  }
 0x46d   :  { %v702_v16 = vadd.f32 %v698_v8, %v681_v9  ;;  %v706_v17 = vadd.f32 %v698_v8, %v685_v10  ;;  %v700_v18 = vadd.f32 %v698_v8, %v679_v11  ;;  %v704_v19 = vadd.f32 %v698_v8, %v683_v12  ;;  %1457 = vmatpush1.bf16.msra.mxu0 %v3074_v22  ;;  %v3115_v10 = vld [vmem:[#allocation8 + $0xd4] ss:$8 sps:$4 sm:$0xff]  }
 0x46e   :  { %v701_v20 = vadd.f32 %v698_v8, %v680_v13  ;;  %v705_v61 = vadd.f32 %v698_v8, %v684_v14  ;;  %v699_v21 = vadd.f32 %v698_v8, %v678_v0  ;;  %v703_v62 = vadd.f32 %v698_v8, %v682_v15  ;;  %1458 = vmatprep.subr.bf16.mxu0 %v3079_v25  ;;  %v3110_v8 = vld [vmem:[#allocation8 + $0xc0] ss:$8 sps:$4 sm:$0xff]   ;;  %v3113_v14 = vld [vmem:[#allocation8 + $0xd0] ss:$8 sps:$4 sm:$0xff]   ;;  %v3118_v0 = vld [vmem:[#allocation8 + $0xe4] ss:$8 sps:$4 sm:$0xff]  }
 0x46f   :  { %vm710_vm8 = vcmp.ge.f32.partialorder %v702_v16, 0.0  ;;  %vm714_vm9 = vcmp.ge.f32.partialorder %v706_v17, 0.0  ;;  %v718_v58 = vmul.f32 0.01, %v702_v16  ;;  %v722_v63 = vmul.f32 0.01, %v706_v17 }
 0x470   :  { %vm708_vm10 = vcmp.ge.f32.partialorder %v700_v18, 0.0  ;;  %vm712_vm11 = vcmp.ge.f32.partialorder %v704_v19, 0.0  ;;  %v716_v1 = vmul.f32 0.01, %v700_v18  ;;  %v720_v59 = vmul.f32 0.01, %v704_v19 }
 0x471   :  { %v4031_v60 = vsel %vm710_vm8, %v702_v16, %v718_v58  ;;  %v4033_v23 = vsel %vm714_vm9, %v706_v17, %v722_v63  ;;  %vm709_vm12 = vcmp.ge.f32.partialorder %v701_v20, 0.0  ;;  %vm713_vm13 = vcmp.ge.f32.partialorder %v705_v61, 0.0  ;;  %1459 = vmatpush1.bf16.msra.mxu0 %v3077_v24  ;;  %v3124_v58 = vld [vmem:[#allocation8 + $0x104] ss:$8 sps:$4 sm:$0xff]  }
 0x472   :  { %v2998_v26 = vpack.i.bf16 %v4033_v23, %v4031_v60  ;;  %v4037_v27 = vsel %vm708_vm10, %v700_v18, %v716_v1  ;;  %v4039_v28 = vsel %vm712_vm11, %v704_v19, %v720_v59  ;;  %v717_v29 = vmul.f32 0.01, %v701_v20  ;;  %1460 = vmatprep.subr.bf16.mxu0 %v3082_v30  ;;  %v3116_v19 = vld [vmem:[#allocation8 + $0xe0] ss:$8 sps:$4 sm:$0xff]  }
 0x473   :  { %v3003_v31 = vpack.i.bf16 %v4039_v28, %v4037_v27  ;;  %v721_v32 = vmul.f32 0.01, %v705_v61  ;;  %vm707_vm14 = vcmp.ge.f32.partialorder %v699_v21, 0.0  ;;  %vm711_vm15 = vcmp.ge.f32.partialorder %v703_v62, 0.0 }
 0x474   :  { %2999 = vrot.lane.b32.xlu1 %v2998_v26, %s3676_s5  ;;  %v4045_v33 = vsel %vm709_vm12, %v701_v20, %v717_v29  ;;  %v715_v34 = vmul.f32 0.01, %v699_v21  ;;  %v719_v35 = vmul.f32 0.01, %v703_v62  ;;  %vm2558_vm9 = vcmask 818176  }
 0x475   :  { %3004 = vrot.lane.b32.xlu0 %v3003_v31, %s3676_s5  ;;  %v4049_v36 = vsel %vm713_vm13, %v705_v61, %v721_v32  ;;  %1461 = vmatpush1.bf16.msra.mxu0 %v3080_v37  ;;  %vm2605_vm10 = vcmask 25600  }
 0x476   :  { %v3008_v38 = vpack.i.bf16 %v4049_v36, %v4045_v33  ;;  %v4053_v39 = vsel %vm707_vm14, %v699_v21, %v715_v34  ;;  %v4055_v40 = vsel %vm711_vm15, %v703_v62, %v719_v35  ;;  %1462 = vmatprep.subr.bf16.mxu0 %v3085_v41  ;;  %v3121_v21 = vld [vmem:[#allocation8 + $0xf4] ss:$8 sps:$4 sm:$0xff]  }
 0x477   :  { %v3013_v42 = vpack.i.bf16 %v4055_v40, %v4053_v39 }
 0x478   :  { %3009 = vrot.lane.b32.xlu1 %v3008_v38, %s3676_s5 }
 0x479   :  { %3014 = vrot.lane.b32.xlu0 %v3013_v42, %s3676_s5  ;;  %1463 = vmatpush1.bf16.msra.mxu0 %v3083_v43 }
 0x47a   :  { %1464 = vmatprep.subr.bf16.mxu0 %v3088_v44 }
 0x47d   :  { %1465 = vmatpush1.bf16.msra.mxu0 %v3086_v45 }
 0x47e   :  { %1466 = vmatprep.subr.bf16.mxu0 %v3091_v46 }
 0x481   :  { %1467 = vmatpush1.bf16.msra.mxu0 %v3089_v47 }
 0x482   :  { %1468 = vmatprep.subr.bf16.mxu0 %v3094_v48 }
 0x485   :  { %1469 = vmatpush1.bf16.msra.mxu0 %v3092_v49 }
 0x486   :  { %1470 = vmatprep.subr.bf16.mxu0 %v3097_v50 }
 0x489   :  { %1471 = vmatpush1.bf16.msra.mxu0 %v3095_v51 }
 0x48a   :  { %1472 = vmatprep.subr.bf16.mxu0 %v3100_v54 }
 0x48d   :  { %1473 = vmatpush1.bf16.msra.mxu0 %v3098_v55 }
 0x48e   :  { %1474 = vmatprep.subr.bf16.mxu0 %v3103_v56 }
 0x491   :  { %1475 = vmatpush1.bf16.msra.mxu0 %v3101_v2 }
 0x492   :  { %1476 = vmatprep.subr.bf16.mxu0 %v3106_v3 }
 0x495   :  { %1477 = vmatpush1.bf16.msra.mxu0 %v3104_v4 }
 0x496   :  { %1478 = vmatprep.subr.bf16.mxu0 %v3109_v6 }
 0x499   :  { %1479 = vmatpush1.bf16.msra.mxu0 %v3107_v7 }
 0x49a   :  { %1480 = vmatprep.subr.bf16.mxu0 %v3112_v5 }
 0x49d   :  { %1481 = vmatpush1.bf16.msra.mxu0 %v3110_v8 }
 0x49e   :  { %1482 = vmatprep.subr.bf16.mxu0 %v3115_v10 }
 0x4a1   :  { %1483 = vmatpush1.bf16.msra.mxu0 %v3113_v14 }
 0x4a2   :  { %1484 = vmatprep.subr.bf16.mxu0 %v3118_v0 }
 0x4a5   :  { %1485 = vmatpush1.bf16.msra.mxu0 %v3116_v19  ;;  %v3122_v19 = vld [vmem:[#allocation8 + $0x100] ss:$8 sps:$4 sm:$0xff]  }
 0x4a6   :  { %1486 = vmatprep.subr.bf16.mxu0 %v3121_v21 }
 0x4a9   :  { %1487 = vmatpush1.bf16.msra.mxu0 %v3119_v57  ;;  %v3127_v57 = vld [vmem:[#allocation8 + $0x114] ss:$8 sps:$4 sm:$0xff]  }
 0x4aa   :  { %1497 = vmatprep.subr.bf16.mxu0 %v3124_v58 }
 0x4e6   :  { %v3000_v9 = vpop.permute.xlu1 %2999 }
 0x4e7   :  { %v3002_v11 = vunpack.i.h.bf16 %v3000_v9  ;;  %v3001_v12 = vunpack.i.l.bf16 %v3000_v9  ;;  %v3005_v13 = vpop.permute.xlu0 %3004 }
 0x4e8   :  { %v3007_v15 = vunpack.i.h.bf16 %v3005_v13  ;;  %v3006_v16 = vunpack.i.l.bf16 %v3005_v13 }
 0x4e9   :  { %v769_v17 = vmax.f32 %v4031_v60, %v3001_v12  ;;  %v770_v18 = vmax.f32 %v4033_v23, %v3002_v11 }
 0x4ea   :  { %v749_v20 = vmax.f32 %v4037_v27, %v3006_v16  ;;  %v750_v61 = vmax.f32 %v4039_v28, %v3007_v15  ;;  %v3010_v63 = vpop.permute.xlu1 %3009 }
 0x4eb   :  { %v3018_v62 = vpack.i.bf16 %v770_v18, %v769_v17  ;;  %v3015_v1 = vpop.permute.xlu0 %3014  ;;  %v3012_v59 = vunpack.i.h.bf16 %v3010_v63  ;;  %v3011_v60 = vunpack.i.l.bf16 %v3010_v63 }
 0x4ec   :  { %v3023_v22 = vpack.i.bf16 %v750_v61, %v749_v20  ;;  %v3017_v23 = vunpack.i.h.bf16 %v3015_v1  ;;  %v3016_v24 = vunpack.i.l.bf16 %v3015_v1 }
 0x4ed   :  { %3019 = vrot.lane.b32.xlu1 %v3018_v62, %s3676_s5  ;;  %v760_v26 = vmax.f32 %v4049_v36, %v3012_v59  ;;  %v759_v27 = vmax.f32 %v4045_v33, %v3011_v60 }
 0x4ee   :  { %3024 = vrot.lane.b32.xlu0 %v3023_v22, %s3676_s5  ;;  %v740_v31 = vmax.f32 %v4055_v40, %v3017_v23  ;;  %v739_v32 = vmax.f32 %v4053_v39, %v3016_v24 }
 0x55f   :  { %v3020_v25 = vpop.permute.xlu1 %3019 }
 0x560   :  { %v3022_v28 = vunpack.i.h.bf16 %v3020_v25  ;;  %v3021_v29 = vunpack.i.l.bf16 %v3020_v25  ;;  %v3025_v30 = vpop.permute.xlu0 %3024  ;;  %v3125_v25 = vld [vmem:[#allocation8 + $0x110] ss:$8 sps:$4 sm:$0xff]  }
 0x561   :  { %v3027_v34 = vunpack.i.h.bf16 %v3025_v30  ;;  %v3026_v35 = vunpack.i.l.bf16 %v3025_v30 }
 0x562   :  { %v789_v37 = vsel %vm588_vm7, %v759_v27, %v3021_v29  ;;  %v790_v38 = vsel %vm588_vm7, %v760_v26, %v3022_v28  ;;  %v3130_v29 = vld [vmem:[#allocation8 + $0x124] ss:$8 sps:$4 sm:$0xff]  }
 0x563   :  { %v798_v41 = vrot.slane %v789_v37, 1  ;;  %v799_v42 = vrot.slane %v790_v38, 1  ;;  %v787_v43 = vsel %vm588_vm7, %v739_v32, %v3026_v35  ;;  %v788_v36 = vsel %vm588_vm7, %v740_v31, %v3027_v34  ;;  %v3128_v32 = vld [vmem:[#allocation8 + $0x120] ss:$8 sps:$4 sm:$0xff]   ;;  %v3133_v34 = vld [vmem:[#allocation8 + $0x134] ss:$8 sps:$4 sm:$0xff]  }
 0x564   :  { %v795_v33 = vrot.slane %v787_v43, 1  ;;  %v796_v44 = vrot.slane %v788_v36, 1  ;;  %v3131_v35 = vld [vmem:[#allocation8 + $0x130] ss:$8 sps:$4 sm:$0xff]   ;;  %vm2459_vm7 = vcmask 812032  }
 0x565   :  { %v800_v45 = vsel %vm214_vm0, %v798_v41, %v799_v42  ;;  %v808_v46 = vmax.f32 %v790_v38, %v799_v42  ;;  %v3134_v38 = vld [vmem:[#allocation8 + $0x140] ss:$8 sps:$4 sm:$0xff]   ;;  %v3139_v41 = vld [vmem:[#allocation8 + $0x154] ss:$8 sps:$4 sm:$0xff]   ;;  %v3137_v42 = vld [vmem:[#allocation8 + $0x150] ss:$8 sps:$4 sm:$0xff]  }
 0x566   :  { %v806_v39 = vmax.f32 %v789_v37, %v800_v45  ;;  %v797_v40 = vsel %vm214_vm0, %v795_v33, %v796_v44  ;;  %v807_v47 = vmax.f32 %v788_v36, %v796_v44  ;;  %v3136_v37 = vld [vmem:[#allocation8 + $0x144] ss:$8 sps:$4 sm:$0xff]   ;;  %v3140_v36 = vld [vmem:[#allocation8 + $0x160] ss:$8 sps:$4 sm:$0xff]   ;;  %v3145_v33 = vld [vmem:[#allocation8 + $0x174] ss:$8 sps:$4 sm:$0xff]  }
 0x567   :  { %v805_v48 = vmax.f32 %v787_v43, %v797_v40  ;;  %v818_v49 = vrot.slane %v808_v46, 6  ;;  %v822_v50 = vrot.slane %v808_v46, 7  ;;  %v843_v51 = vrot.slane %v808_v46, 1  ;;  %v3142_v43 = vld [vmem:[#allocation8 + $0x164] ss:$8 sps:$4 sm:$0xff]  }
 0x568   :  { %v812_v54 = vrot.slane %v806_v39, 1  ;;  %v817_v55 = vrot.slane %v807_v47, 6  ;;  %v821_v56 = vrot.slane %v807_v47, 7  ;;  %v835_v2 = vrot.slane %v806_v39, 2  ;;  %v3143_v44 = vld [vmem:[#allocation8 + $0x170] ss:$8 sps:$4 sm:$0xff]  }
 0x569   :  { %v811_v3 = vrot.slane %v805_v48, 1  ;;  %v839_v4 = vrot.slane %v806_v39, 3  ;;  %v834_v6 = vrot.slane %v805_v48, 2  ;;  %v838_v7 = vrot.slane %v805_v48, 3  ;;  %v3148_v45 = vld [vmem:[#allocation8 + $0x184] ss:$8 sps:$4 sm:$0xff]  }
 0x56a   :  { %v827_v5 = vsel %vm825_vm1, %v806_v39, %v812_v54  ;;  %v842_v8 = vrot.slane %v807_v47, 1  ;;  %v853_v9 = vrot.slane %v806_v39, 4  ;;  %v857_v10 = vrot.slane %v806_v39, 5  ;;  %v3151_v39 = vld [vmem:[#allocation8 + $0x194] ss:$8 sps:$4 sm:$0xff]  }
 0x56b   :  { %v830_v11 = vsel %vm828_vm2, %v827_v5, %v818_v49  ;;  %v826_v12 = vsel %vm825_vm1, %v805_v48, %v811_v3  ;;  %v847_v13 = vsel %vm825_vm1, %v835_v2, %v839_v4  ;;  %v846_v14 = vsel %vm825_vm1, %v834_v6, %v838_v7  ;;  %v3149_v40 = vld [vmem:[#allocation8 + $0x190] ss:$8 sps:$4 sm:$0xff]   ;;  %v3157_v49 = vld [vmem:[#allocation8 + $0x1b4] ss:$8 sps:$4 sm:$0xff]   ;;  %v3158_v54 = vld [vmem:[#allocation8 + $0x1c0] ss:$8 sps:$4 sm:$0xff]  }
 0x56c   :  { %v833_v0 = vsel %vm831_vm4, %v830_v11, %v822_v50  ;;  %v829_v15 = vsel %vm828_vm2, %v826_v12, %v817_v55  ;;  %v849_v16 = vsel %vm828_vm2, %v847_v13, %v808_v46  ;;  %v848_v17 = vsel %vm828_vm2, %v846_v14, %v807_v47  ;;  %v3155_v50 = vld [vmem:[#allocation8 + $0x1b0] ss:$8 sps:$4 sm:$0xff]   ;;  %v3163_v55 = vld [vmem:[#allocation8 + $0x1d4] ss:$8 sps:$4 sm:$0xff]   ;;  %v3166_v2 = vld [vmem:[#allocation8 + $0x1e4] ss:$8 sps:$4 sm:$0xff]  }
 0x56d   :  { %v971_v18 = vpack.c.bf16 %v833_v0, %v833_v0  ;;  %v832_v20 = vsel %vm831_vm4, %v829_v15, %v821_v56  ;;  %v851_v61 = vsel %vm831_vm4, %v849_v16, %v843_v51  ;;  %v4089_v21 = vsel %vm831_vm4, %v848_v17, %v842_v8  ;;  %v3160_v51 = vld [vmem:[#allocation8 + $0x1c4] ss:$8 sps:$4 sm:$0xff]   ;;  %v3161_v56 = vld [vmem:[#allocation8 + $0x1d0] ss:$8 sps:$4 sm:$0xff]   ;;  %v3164_v3 = vld [vmem:[#allocation8 + $0x1e0] ss:$8 sps:$4 sm:$0xff]  }
 0x56e   :  { %v970_v62 = vpack.c.bf16 %v832_v20, %v832_v20  ;;  %v973_v22 = vpack.c.bf16 %v851_v61, %v851_v61  ;;  %v861_v58 = vrot.slane %v808_v46, 2  ;;  %v865_v63 = vrot.slane %v808_v46, 3  ;;  %v3146_v46 = vld [vmem:[#allocation8 + $0x180] ss:$8 sps:$4 sm:$0xff]   ;;  %v3169_v4 = vld [vmem:[#allocation8 + $0x1f4] ss:$8 sps:$4 sm:$0xff]  }
 0x56f   :  { %1488 = vmatprep.mubr.bf16.mxu0 %v971_v18  ;;  %v869_v1 = vsel %vm825_vm1, %v853_v9, %v857_v10  ;;  %v852_v59 = vrot.slane %v805_v48, 4  ;;  %v856_v60 = vrot.slane %v805_v48, 5  ;;  %v860_v24 = vrot.slane %v807_v47, 2  ;;  %v3152_v48 = vld [vmem:[#allocation8 + $0x1a0] ss:$8 sps:$4 sm:$0xff]  }
 0x570   :  { %1489 = vmatmul.mubr.bf16.vlgmr.msra.gmra.mrb[4].mxu0 %v970_v62  ;;  %v871_v23 = vsel %vm828_vm2, %v869_v1, %v861_v58  ;;  %v864_v27 = vrot.slane %v807_v47, 3  ;;  %v3154_v47 = vld [vmem:[#allocation8 + $0x1a4] ss:$8 sps:$4 sm:$0xff]   ;;  %v3167_v6 = vld [vmem:[#allocation8 + $0x1f0] ss:$8 sps:$4 sm:$0xff]   ;;  %v972_v8 = vpack.c.bf16 %v4089_v21, %v4089_v21 }
 0x571   :  { %1498 = vmatpush1.bf16.msra.mxu0 %v3122_v19  ;;  %1529 = vmatprep.mubr.bf16.mxu0 %v973_v22  ;;  %v4094_v26 = vsel %vm831_vm4, %v871_v23, %v865_v63  ;;  %v868_v28 = vsel %vm825_vm1, %v852_v59, %v856_v60  ;;  %v3172_v7 = vld [vmem:[#allocation8 + $0x204] ss:$8 sps:$4 sm:$0xff]   ;;  %v3170_v5 = vld [vmem:[#allocation8 + $0x200] ss:$8 sps:$4 sm:$0xff]   ;;  %v3175_v9 = vld [vmem:[#allocation8 + $0x214] ss:$8 sps:$4 sm:$0xff]  }
 0x572   :  { %1499 = vmatprep.subr.bf16.mxu0 %v3127_v57  ;;  %v870_v30 = vsel %vm828_vm2, %v868_v28, %v860_v24  ;;  %v975_v10 = vpack.c.bf16 %v4094_v26, %v4094_v26  ;;  %v3173_v11 = vld [vmem:[#allocation8 + $0x210] ss:$8 sps:$4 sm:$0xff]   ;;  %v3178_v12 = vld [vmem:[#allocation8 + $0x224] ss:$8 sps:$4 sm:$0xff]   ;;  %v3176_v13 = vld [vmem:[#allocation8 + $0x220] ss:$8 sps:$4 sm:$0xff]  }
 0x573   :  { %v4099_v31 = vsel %vm831_vm4, %v870_v30, %v864_v27  ;;  %v3181_v14 = vld [vmem:[#allocation8 + $0x234] ss:$8 sps:$4 sm:$0xff]   ;;  %v3179_v0 = vld [vmem:[#allocation8 + $0x230] ss:$8 sps:$4 sm:$0xff]   ;;  %v3184_v15 = vld [vmem:[#allocation8 + $0x244] ss:$8 sps:$4 sm:$0xff]  }
 0x574   :  { %v3182_v16 = vld [vmem:[#allocation8 + $0x240] ss:$8 sps:$4 sm:$0xff]   ;;  %v3187_v17 = vld [vmem:[#allocation8 + $0x254] ss:$8 sps:$4 sm:$0xff]   ;;  %v3185_v18 = vld [vmem:[#allocation8 + $0x250] ss:$8 sps:$4 sm:$0xff]  }
 0x575   :  { %1500 = vmatpush1.bf16.msra.mxu0 %v3125_v25  ;;  %v3190_v19 = vld [vmem:[#allocation8 + $0x264] ss:$8 sps:$4 sm:$0xff]   ;;  %v3188_v20 = vld [vmem:[#allocation8 + $0x260] ss:$8 sps:$4 sm:$0xff]   ;;  %v3193_v61 = vld [vmem:[#allocation8 + $0x274] ss:$8 sps:$4 sm:$0xff]  }
 0x576   :  { %1501 = vmatprep.subr.bf16.mxu0 %v3130_v29  ;;  %v3191_v21 = vld [vmem:[#allocation8 + $0x270] ss:$8 sps:$4 sm:$0xff]   ;;  %v3196_v62 = vld [vmem:[#allocation8 + $0x284] ss:$8 sps:$4 sm:$0xff]   ;;  %v3194_v22 = vld [vmem:[#allocation8 + $0x280] ss:$8 sps:$4 sm:$0xff]  }
 0x577   :  { %v3199_v57 = vld [vmem:[#allocation8 + $0x294] ss:$8 sps:$4 sm:$0xff]   ;;  %v3197_v58 = vld [vmem:[#allocation8 + $0x290] ss:$8 sps:$4 sm:$0xff]   ;;  %v3202_v63 = vld [vmem:[#allocation8 + $0x2a4] ss:$8 sps:$4 sm:$0xff]  }
 0x578   :  { %v3200_v1 = vld [vmem:[#allocation8 + $0x2a0] ss:$8 sps:$4 sm:$0xff]   ;;  %v3205_v59 = vld [vmem:[#allocation8 + $0x2b4] ss:$8 sps:$4 sm:$0xff]   ;;  %v3203_v60 = vld [vmem:[#allocation8 + $0x2b0] ss:$8 sps:$4 sm:$0xff]  }
 0x579   :  { %1502 = vmatpush1.bf16.msra.mxu0 %v3128_v32  ;;  %v3208_v23 = vld [vmem:[#allocation8 + $0x2c4] ss:$8 sps:$4 sm:$0xff]   ;;  %v3206_v24 = vld [vmem:[#allocation8 + $0x2c0] ss:$8 sps:$4 sm:$0xff]   ;;  %v3211_v25 = vld [vmem:[#allocation8 + $0x2d4] ss:$8 sps:$4 sm:$0xff]   ;;  %v974_v32 = vpack.c.bf16 %v4099_v31, %v4099_v31 }
 0x57a   :  { %1503 = vmatprep.subr.bf16.mxu0 %v3133_v34  ;;  %v3209_v26 = vld [vmem:[#allocation8 + $0x2d0] ss:$8 sps:$4 sm:$0xff]   ;;  %v3214_v27 = vld [vmem:[#allocation8 + $0x2e4] ss:$8 sps:$4 sm:$0xff]   ;;  %v3212_v28 = vld [vmem:[#allocation8 + $0x2e0] ss:$8 sps:$4 sm:$0xff]  }
 0x57b   :  { %v3217_v29 = vld [vmem:[#allocation8 + $0x2f4] ss:$8 sps:$4 sm:$0xff]   ;;  %v3215_v30 = vld [vmem:[#allocation8 + $0x2f0] ss:$8 sps:$4 sm:$0xff]  }
 0x57c   :  { %v3220_v34 = vld [vmem:[%s4405_s7 + $0x4] ss:$8 sps:$4 sm:$0xff]  }
 0x57d   :  { %1504 = vmatpush1.bf16.msra.mxu0 %v3131_v35  ;;  %v3218_v35 = vld [vmem:[%s4405_s7] ss:$8 sps:$4 sm:$0xff]   ;;  %2057 = vmatprep.subr.bf16.mxu1 %v3220_v34  ;;  %v3226_v31 = vld [vmem:[%s4405_s7 + $0x24] ss:$8 sps:$4 sm:$0xff]  }
 0x57e   :  { %1505 = vmatprep.subr.bf16.mxu0 %v3136_v37  ;;  %2058 = vmatpush1.bf16.msra.mxu1 %v3218_v35  ;;  %v3223_v37 = vld [vmem:[%s4405_s7 + $0x14] ss:$8 sps:$4 sm:$0xff]  }
 0x57f   :  { %2059 = vmatprep.subr.bf16.mxu1 %v3223_v37 }
 0x581   :  { %1506 = vmatpush1.bf16.msra.mxu0 %v3134_v38  ;;  %v3221_v38 = vld [vmem:[%s4405_s7 + $0x10] ss:$8 sps:$4 sm:$0xff]  }
 0x582   :  { %1507 = vmatprep.subr.bf16.mxu0 %v3139_v41  ;;  %2060 = vmatpush1.bf16.msra.mxu1 %v3221_v38  ;;  %v3224_v41 = vld [vmem:[%s4405_s7 + $0x20] ss:$8 sps:$4 sm:$0xff]  }
 0x583   :  { %2061 = vmatprep.subr.bf16.mxu1 %v3226_v31 }
 0x585   :  { %1508 = vmatpush1.bf16.msra.mxu0 %v3137_v42  ;;  %v3229_v42 = vld [vmem:[%s4405_s7 + $0x34] ss:$8 sps:$4 sm:$0xff]  }
 0x586   :  { %1509 = vmatprep.subr.bf16.mxu0 %v3142_v43  ;;  %2062 = vmatpush1.bf16.msra.mxu1 %v3224_v41  ;;  %v3227_v43 = vld [vmem:[%s4405_s7 + $0x30] ss:$8 sps:$4 sm:$0xff]  }
 0x587   :  { %2063 = vmatprep.subr.bf16.mxu1 %v3229_v42 }
 0x589   :  { %1510 = vmatpush1.bf16.msra.mxu0 %v3140_v36  ;;  %v3232_v36 = vld [vmem:[%s4405_s7 + $0x44] ss:$8 sps:$4 sm:$0xff]  }
 0x58a   :  { %1511 = vmatprep.subr.bf16.mxu0 %v3145_v33  ;;  %2064 = vmatpush1.bf16.msra.mxu1 %v3227_v43  ;;  %v3230_v33 = vld [vmem:[%s4405_s7 + $0x40] ss:$8 sps:$4 sm:$0xff]  }
 0x58b   :  { %2065 = vmatprep.subr.bf16.mxu1 %v3232_v36 }
 0x58d   :  { %1512 = vmatpush1.bf16.msra.mxu0 %v3143_v44  ;;  %v3235_v44 = vld [vmem:[%s4405_s7 + $0x54] ss:$8 sps:$4 sm:$0xff]  }
 0x58e   :  { %1513 = vmatprep.subr.bf16.mxu0 %v3148_v45  ;;  %2066 = vmatpush1.bf16.msra.mxu1 %v3230_v33  ;;  %v3233_v45 = vld [vmem:[%s4405_s7 + $0x50] ss:$8 sps:$4 sm:$0xff]  }
 0x58f   :  { %2067 = vmatprep.subr.bf16.mxu1 %v3235_v44 }
 0x591   :  { %1514 = vmatpush1.bf16.msra.mxu0 %v3146_v46  ;;  %v3238_v46 = vld [vmem:[%s4405_s7 + $0x64] ss:$8 sps:$4 sm:$0xff]  }
 0x592   :  { %1515 = vmatprep.subr.bf16.mxu0 %v3151_v39  ;;  %2068 = vmatpush1.bf16.msra.mxu1 %v3233_v45  ;;  %v3236_v39 = vld [vmem:[%s4405_s7 + $0x60] ss:$8 sps:$4 sm:$0xff]  }
 0x593   :  { %2069 = vmatprep.subr.bf16.mxu1 %v3238_v46 }
 0x595   :  { %1516 = vmatpush1.bf16.msra.mxu0 %v3149_v40  ;;  %v3241_v40 = vld [vmem:[%s4405_s7 + $0x74] ss:$8 sps:$4 sm:$0xff]  }
 0x596   :  { %1517 = vmatprep.subr.bf16.mxu0 %v3154_v47  ;;  %2070 = vmatpush1.bf16.msra.mxu1 %v3236_v39  ;;  %v3239_v47 = vld [vmem:[%s4405_s7 + $0x70] ss:$8 sps:$4 sm:$0xff]   ;;  %v1579_v39 = vld [vmem:[#allocation10] sm:$0x1] }
 0x597   :  { %2071 = vmatprep.subr.bf16.mxu1 %v3241_v40 }
 0x599   :  { %1518 = vmatpush1.bf16.msra.mxu0 %v3152_v48  ;;  %v3244_v48 = vld [vmem:[%s4405_s7 + $0x84] ss:$8 sps:$4 sm:$0xff]  }
 0x59a   :  { %1519 = vmatprep.subr.bf16.mxu0 %v3157_v49  ;;  %2072 = vmatpush1.bf16.msra.mxu1 %v3239_v47  ;;  %v3242_v49 = vld [vmem:[%s4405_s7 + $0x80] ss:$8 sps:$4 sm:$0xff]  }
 0x59b   :  { %2073 = vmatprep.subr.bf16.mxu1 %v3244_v48 }
 0x59d   :  { %1520 = vmatpush1.bf16.msra.mxu0 %v3155_v50  ;;  %v3247_v50 = vld [vmem:[%s4405_s7 + $0x94] ss:$8 sps:$4 sm:$0xff]  }
 0x59e   :  { %1521 = vmatprep.subr.bf16.mxu0 %v3160_v51  ;;  %2074 = vmatpush1.bf16.msra.mxu1 %v3242_v49  ;;  %v3245_v51 = vld [vmem:[%s4405_s7 + $0x90] ss:$8 sps:$4 sm:$0xff]   ;;  %v2771_v49 = vld [vmem:[#allocation11] ss:$0 sm:$0xff] }
 0x59f   :  { %2075 = vmatprep.subr.bf16.mxu1 %v3247_v50 }
 0x5a1   :  { %1522 = vmatpush1.bf16.msra.mxu0 %v3158_v54  ;;  %v3250_v54 = vld [vmem:[%s4405_s7 + $0xa4] ss:$8 sps:$4 sm:$0xff]  }
 0x5a2   :  { %1523 = vmatprep.subr.bf16.mxu0 %v3163_v55  ;;  %2076 = vmatpush1.bf16.msra.mxu1 %v3245_v51  ;;  %v3248_v55 = vld [vmem:[%s4405_s7 + $0xa0] ss:$8 sps:$4 sm:$0xff]  }
 0x5a3   :  { %2077 = vmatprep.subr.bf16.mxu1 %v3250_v54 }
 0x5a5   :  { %1524 = vmatpush1.bf16.msra.mxu0 %v3161_v56  ;;  %v3253_v56 = vld [vmem:[%s4405_s7 + $0xb4] ss:$8 sps:$4 sm:$0xff]  }
 0x5a6   :  { %1525 = vmatprep.subr.bf16.mxu0 %v3166_v2  ;;  %2078 = vmatpush1.bf16.msra.mxu1 %v3248_v55  ;;  %v3251_v2 = vld [vmem:[%s4405_s7 + $0xb0] ss:$8 sps:$4 sm:$0xff]  }
 0x5a7   :  { %2079 = vmatprep.subr.bf16.mxu1 %v3253_v56 }
 0x5a9   :  { %1526 = vmatpush1.bf16.msra.mxu0 %v3164_v3  ;;  %v3256_v3 = vld [vmem:[%s4405_s7 + $0xc4] ss:$8 sps:$4 sm:$0xff]  }
 0x5aa   :  { %1527 = vmatprep.subr.bf16.mxu0 %v3169_v4  ;;  %2080 = vmatpush1.bf16.msra.mxu1 %v3251_v2  ;;  %v3254_v4 = vld [vmem:[%s4405_s7 + $0xc0] ss:$8 sps:$4 sm:$0xff]  }
 0x5ab   :  { %2081 = vmatprep.subr.bf16.mxu1 %v3256_v3 }
 0x5ad   :  { %1528 = vmatpush1.bf16.msra.mxu0 %v3167_v6  ;;  %v3259_v6 = vld [vmem:[%s4405_s7 + $0xd4] ss:$8 sps:$4 sm:$0xff]  }
 0x5ae   :  { %1538 = vmatprep.subr.bf16.mxu0 %v3172_v7  ;;  %2082 = vmatpush1.bf16.msra.mxu1 %v3254_v4  ;;  %v3257_v7 = vld [vmem:[%s4405_s7 + $0xd0] ss:$8 sps:$4 sm:$0xff]  }
 0x5af   :  { %2083 = vmatprep.subr.bf16.mxu1 %v3259_v6 }
 0x5b0   :  { %1530 = vmatmul.mubr.bf16.vlgmr.msra.gmra.mrb[4].mxu0 %v972_v8  ;;  %v3260_v8 = vld [vmem:[%s4405_s7 + $0xe0] ss:$8 sps:$4 sm:$0xff]  }
 0x5b1   :  { %1539 = vmatpush1.bf16.msra.mxu0 %v3170_v5  ;;  %1570 = vmatprep.mubr.bf16.mxu0 %v975_v10  ;;  %v3262_v5 = vld [vmem:[%s4405_s7 + $0xe4] ss:$8 sps:$4 sm:$0xff]   ;;  %v3263_v10 = vld [vmem:[%s4405_s7 + $0xf0] ss:$8 sps:$4 sm:$0xff]  }
 0x5b2   :  { %1540 = vmatprep.subr.bf16.mxu0 %v3175_v9  ;;  %2084 = vmatpush1.bf16.msra.mxu1 %v3257_v7  ;;  %v3265_v9 = vld [vmem:[%s4405_s7 + $0xf4] ss:$8 sps:$4 sm:$0xff]  }
 0x5b3   :  { %2085 = vmatprep.subr.bf16.mxu1 %v3262_v5 }
 0x5b5   :  { %1541 = vmatpush1.bf16.msra.mxu0 %v3173_v11  ;;  %v3268_v11 = vld [vmem:[%s4405_s7 + $0x104] ss:$8 sps:$4 sm:$0xff]  }
 0x5b6   :  { %1542 = vmatprep.subr.bf16.mxu0 %v3178_v12  ;;  %2086 = vmatpush1.bf16.msra.mxu1 %v3260_v8 }
 0x5b7   :  { %2087 = vmatprep.subr.bf16.mxu1 %v3265_v9 }
 0x5b9   :  { %1543 = vmatpush1.bf16.msra.mxu0 %v3176_v13 }
 0x5ba   :  { %1544 = vmatprep.subr.bf16.mxu0 %v3181_v14  ;;  %2088 = vmatpush1.bf16.msra.mxu1 %v3263_v10 }
 0x5bb   :  { %2098 = vmatprep.subr.bf16.mxu1 %v3268_v11 }
 0x5bd   :  { %1545 = vmatpush1.bf16.msra.mxu0 %v3179_v0 }
 0x5be   :  { %1546 = vmatprep.subr.bf16.mxu0 %v3184_v15 }
 0x5c1   :  { %1547 = vmatpush1.bf16.msra.mxu0 %v3182_v16 }
 0x5c2   :  { %1548 = vmatprep.subr.bf16.mxu0 %v3187_v17 }
 0x5c5   :  { %1549 = vmatpush1.bf16.msra.mxu0 %v3185_v18 }
 0x5c6   :  { %1550 = vmatprep.subr.bf16.mxu0 %v3190_v19 }
 0x5c9   :  { %1551 = vmatpush1.bf16.msra.mxu0 %v3188_v20 }
 0x5ca   :  { %1552 = vmatprep.subr.bf16.mxu0 %v3193_v61 }
 0x5cd   :  { %1553 = vmatpush1.bf16.msra.mxu0 %v3191_v21 }
 0x5ce   :  { %1554 = vmatprep.subr.bf16.mxu0 %v3196_v62 }
 0x5d1   :  { %1555 = vmatpush1.bf16.msra.mxu0 %v3194_v22 }
 0x5d2   :  { %1556 = vmatprep.subr.bf16.mxu0 %v3199_v57 }
 0x5d5   :  { %1557 = vmatpush1.bf16.msra.mxu0 %v3197_v58 }
 0x5d6   :  { %1558 = vmatprep.subr.bf16.mxu0 %v3202_v63 }
 0x5d9   :  { %1559 = vmatpush1.bf16.msra.mxu0 %v3200_v1 }
 0x5da   :  { %1560 = vmatprep.subr.bf16.mxu0 %v3205_v59 }
 0x5dd   :  { %1561 = vmatpush1.bf16.msra.mxu0 %v3203_v60 }
 0x5de   :  { %1562 = vmatprep.subr.bf16.mxu0 %v3208_v23 }
 0x5e1   :  { %1563 = vmatpush1.bf16.msra.mxu0 %v3206_v24 }
 0x5e2   :  { %1564 = vmatprep.subr.bf16.mxu0 %v3211_v25 }
 0x5e5   :  { %1565 = vmatpush1.bf16.msra.mxu0 %v3209_v26 }
 0x5e6   :  { %1566 = vmatprep.subr.bf16.mxu0 %v3214_v27 }
 0x5e9   :  { %1567 = vmatpush1.bf16.msra.mxu0 %v3212_v28 }
 0x5ea   :  { %1568 = vmatprep.subr.bf16.mxu0 %v3217_v29 }
 0x5ed   :  { %1569 = vmatpush1.bf16.msra.mxu0 %v3215_v30 }
 0x5f0   :  { %1571 = vmatmul.mubr.bf16.vlgmr.msra.gmra.mrb[4].mxu0 %v974_v32 }
 0x6c3   :  { %v1572_v12 = vpop.f32.mrb[4].mxu0 }
 0x6c4   :  { %v1581_v13 = vsel %vm224_vm3, %v1572_v12, 0.0  ;;  %v1574_v14 = vpop.f32.mrb[5].mxu0 }
 0x6c5   :  { %v1582_v0 = vrot.slane %v1581_v13, 4  ;;  %v1588_v15 = vsel %vm224_vm3, %v1574_v14, 0.0  ;;  %v1576_v16 = vpop.f32.mrb[6].mxu0 }
 0x6c6   :  { %v1589_v17 = vrot.slane %v1588_v15, 4  ;;  %v1577_v18 = vpop.f32.mrb[7].mxu0 }
 0x6c7   :  { %v1583_v19 = vadd.f32 %v1582_v0, %v1581_v13  ;;  %v3271_v0 = vld [vmem:[%s4405_s7 + $0x114] ss:$8 sps:$4 sm:$0xff]   ;;  %v3274_v18 = vld [vmem:[%s4405_s7 + $0x124] ss:$8 sps:$4 sm:$0xff]  }
 0x6c8   :  { %v1590_v20 = vadd.f32 %v1589_v17, %v1588_v15  ;;  %v3269_v17 = vld [vmem:[%s4405_s7 + $0x110] ss:$8 sps:$4 sm:$0xff]  }
 0x6c9   :  { %v1584_v61 = vrot.slane %v1583_v19, 2 }
 0x6ca   :  { %v1591_v21 = vrot.slane %v1590_v20, 2 }
 0x6cb   :  { %v1585_v62 = vadd.f32 %v1584_v61, %v1583_v19  ;;  %v3272_v19 = vld [vmem:[%s4405_s7 + $0x120] ss:$8 sps:$4 sm:$0xff]   ;;  %v3275_v61 = vld [vmem:[%s4405_s7 + $0x130] ss:$8 sps:$4 sm:$0xff]  }
 0x6cc   :  { %v1592_v22 = vadd.f32 %v1591_v21, %v1590_v20  ;;  %v3277_v20 = vld [vmem:[%s4405_s7 + $0x134] ss:$8 sps:$4 sm:$0xff]   ;;  %v3280_v21 = vld [vmem:[%s4405_s7 + $0x144] ss:$8 sps:$4 sm:$0xff]  }
 0x6cd   :  { %v1586_v57 = vrot.slane %v1585_v62, 1 }
 0x6ce   :  { %v1593_v58 = vrot.slane %v1592_v22, 1 }
 0x6cf   :  { %v1587_v63 = vadd.f32 %v1586_v57, %v1585_v62  ;;  %v3278_v62 = vld [vmem:[%s4405_s7 + $0x140] ss:$8 sps:$4 sm:$0xff]   ;;  %v3281_v57 = vld [vmem:[%s4405_s7 + $0x150] ss:$8 sps:$4 sm:$0xff]  }
 0x6d0   :  { %v1594_v1 = vadd.f32 %v1593_v58, %v1592_v22  ;;  %v3283_v22 = vld [vmem:[%s4405_s7 + $0x154] ss:$8 sps:$4 sm:$0xff]   ;;  %v3286_v58 = vld [vmem:[%s4405_s7 + $0x164] ss:$8 sps:$4 sm:$0xff]  }
 0x6d2   :  { %v1595_v59 = vadd.f32 %v1594_v1, %v1587_v63  ;;  %v3284_v63 = vld [vmem:[%s4405_s7 + $0x160] ss:$8 sps:$4 sm:$0xff]   ;;  %v3289_v1 = vld [vmem:[%s4405_s7 + $0x174] ss:$8 sps:$4 sm:$0xff]  }
 0x6d4   :  { %v1597_v60 = vmul.f32 0.125, %v1595_v59  ;;  %v3287_v59 = vld [vmem:[%s4405_s7 + $0x170] ss:$8 sps:$4 sm:$0xff]  }
 0x6d6   :  { %v1601_v23 = vrot.slane %v1597_v60, %v3974_v53  ;;  %v3292_v60 = vld [vmem:[%s4405_s7 + $0x184] ss:$8 sps:$4 sm:$0xff]  }
 0x6d8   :  { %v1602_v24 = vsub.f32 %v1572_v12, %v1601_v23  ;;  %v1603_v25 = vsub.f32 %v1574_v14, %v1601_v23  ;;  %v3266_v12 = vld [vmem:[%s4405_s7 + $0x100] ss:$8 sps:$4 sm:$0xff]  }
 0x6d9   :  { %v3290_v23 = vld [vmem:[%s4405_s7 + $0x180] ss:$8 sps:$4 sm:$0xff]  }
 0x6da   :  { %v1604_v26 = vmul.f32 %v1602_v24, %v1602_v24  ;;  %v1605_v27 = vmul.f32 %v1603_v25, %v1603_v25 }
 0x6dc   :  { %v1606_v28 = vsel %vm224_vm3, %v1604_v26, 0.0  ;;  %v1613_v29 = vsel %vm224_vm3, %v1605_v27, 0.0  ;;  %v3298_v26 = vld [vmem:[%s4405_s7 + $0x1a4] ss:$8 sps:$4 sm:$0xff]   ;;  %v3296_v27 = vld [vmem:[%s4405_s7 + $0x1a0] ss:$8 sps:$4 sm:$0xff]  }
 0x6dd   :  { %v1607_v30 = vrot.slane %v1606_v28, 4  ;;  %v1614_v32 = vrot.slane %v1613_v29, 4 }
 0x6df   :  { %v1608_v34 = vadd.f32 %v1607_v30, %v1606_v28  ;;  %v1615_v35 = vadd.f32 %v1614_v32, %v1613_v29  ;;  %v3301_v28 = vld [vmem:[%s4405_s7 + $0x1b4] ss:$8 sps:$4 sm:$0xff]   ;;  %v3299_v29 = vld [vmem:[%s4405_s7 + $0x1b0] ss:$8 sps:$4 sm:$0xff]   ;;  %v3304_v30 = vld [vmem:[%s4405_s7 + $0x1c4] ss:$8 sps:$4 sm:$0xff]  }
 0x6e0   :  { %v3302_v32 = vld [vmem:[%s4405_s7 + $0x1c0] ss:$8 sps:$4 sm:$0xff]  }
 0x6e1   :  { %v1609_v37 = vrot.slane %v1608_v34, 2  ;;  %v1616_v38 = vrot.slane %v1615_v35, 2 }
 0x6e3   :  { %v1610_v31 = vadd.f32 %v1609_v37, %v1608_v34  ;;  %v1617_v41 = vadd.f32 %v1616_v38, %v1615_v35  ;;  %v3307_v34 = vld [vmem:[%s4405_s7 + $0x1d4] ss:$8 sps:$4 sm:$0xff]   ;;  %v3305_v35 = vld [vmem:[%s4405_s7 + $0x1d0] ss:$8 sps:$4 sm:$0xff]   ;;  %v3310_v37 = vld [vmem:[%s4405_s7 + $0x1e4] ss:$8 sps:$4 sm:$0xff]  }
 0x6e4   :  { %v3308_v38 = vld [vmem:[%s4405_s7 + $0x1e0] ss:$8 sps:$4 sm:$0xff]  }
 0x6e5   :  { %v1611_v42 = vrot.slane %v1610_v31, 1  ;;  %v1618_v43 = vrot.slane %v1617_v41, 1 }
 0x6e7   :  { %v1612_v36 = vadd.f32 %v1611_v42, %v1610_v31  ;;  %v1619_v33 = vadd.f32 %v1618_v43, %v1617_v41  ;;  %v3313_v31 = vld [vmem:[%s4405_s7 + $0x1f4] ss:$8 sps:$4 sm:$0xff]   ;;  %v3311_v41 = vld [vmem:[%s4405_s7 + $0x1f0] ss:$8 sps:$4 sm:$0xff]  }
 0x6e8   :  { %v3314_v42 = vld [vmem:[#allocation13 + $0x40] sm:$0xff]  }
 0x6e9   :  { %v1620_v44 = vadd.f32 %v1619_v33, %v1612_v36  ;;  %v3315_v43 = vld [vmem:[#allocation13] sm:$0xff]   ;;  %v3316_v33 = vld [vmem:[#allocation13 + $0x48] sm:$0xff]  }
 0x6eb   :  { %v1621_v45 = vmul.f32 0.125, %v1620_v44  ;;  %v3317_v44 = vld [vmem:[#allocation13 + $0x8] sm:$0xff]  }
 0x6ed   :  { %v1622_v46 = vadd.f32 0.0001, %v1621_v45  ;;  %v3318_v45 = vld [vmem:[#allocation13 + $0x50] sm:$0xff]  }
 0x6ef   :  { %3347 = vrsqrt.f32 %v1622_v46  ;;  %v3319_v46 = vld [vmem:[#allocation13 + $0x10] sm:$0xff]  }
 0x6f9   :  { %v3348_v40 = vpop.eup %3347 }
 0x6fa   :  { %v1624_v47 = vmul.f32 %v3348_v40, %v1579_v39  ;;  %v3320_v39 = vld [vmem:[#allocation13 + $0x58] sm:$0xff]  }
 0x6fb   :  { %v3321_v40 = vld [vmem:[#allocation13 + $0x18] sm:$0xff]  }
 0x6fc   :  { %v1628_v48 = vrot.slane %v1624_v47, %v3974_v53  ;;  %v3322_v47 = vld [vmem:[#allocation13 + $0x60] sm:$0xff]  }
 0x6fe   :  { %v1629_v50 = vmul.f32 %v1628_v48, %v1602_v24  ;;  %v1630_v51 = vmul.f32 %v1628_v48, %v1603_v25  ;;  %v3295_v24 = vld [vmem:[%s4405_s7 + $0x194] ss:$8 sps:$4 sm:$0xff]   ;;  %v3293_v25 = vld [vmem:[%s4405_s7 + $0x190] ss:$8 sps:$4 sm:$0xff]  }
 0x6ff   :  { %v3323_v48 = vld [vmem:[#allocation13 + $0x20] sm:$0xff]  }
 0x700   :  { %v1635_v54 = vadd.f32 %v2771_v49, %v1629_v50  ;;  %v1636_v55 = vadd.f32 %v2771_v49, %v1630_v51  ;;  %v3324_v49 = vld [vmem:[#allocation13 + $0x68] sm:$0xff]   ;;  %v3326_v51 = vld [vmem:[#allocation13 + $0x70] sm:$0xff]  }
 0x701   :  { %v3325_v50 = vld [vmem:[#allocation13 + $0x28] sm:$0xff]  }
 0x702   :  { %v1639_v56 = vmul.f32 0.01, %v1635_v54  ;;  %v1640_v2 = vmul.f32 0.01, %v1636_v55  ;;  %vm1638_vm0 = vcmp.ge.f32.partialorder %v1636_v55, 0.0  ;;  %vm1637_vm3 = vcmp.ge.f32.partialorder %v1635_v54, 0.0 }
 0x704   :  { %v1642_v3 = vsel %vm1638_vm0, %v1636_v55, %v1640_v2  ;;  %v1641_v4 = vsel %vm1637_vm3, %v1635_v54, %v1639_v56  ;;  %v3327_v54 = vld [vmem:[#allocation13 + $0x30] sm:$0xff]   ;;  %v3328_v55 = vld [vmem:[#allocation13 + $0x78] sm:$0xff]   ;;  %v1725_v2 = vld [vmem:[%s4406_s8] sm:$0x3] }
 0x705   :  { %v1646_v6 = vrot.slane %v1642_v3, 1  ;;  %v1645_v7 = vrot.slane %v1641_v4, 1  ;;  %v3329_v56 = vld [vmem:[#allocation13 + $0x38] sm:$0xff]  }
 0x707   :  { %v1654_v5 = vsel %vm825_vm1, %v1642_v3, %v1646_v6  ;;  %v1653_v8 = vsel %vm825_vm1, %v1641_v4, %v1645_v7  ;;  %v1650_v9 = vrot.slane %v1646_v6, 1  ;;  %v1649_v10 = vrot.slane %v1645_v7, 1 }
 0x708   :  { %v1722_v11 = vpack.c.bf16 %v1654_v5, %v1654_v5  ;;  %v1721_v13 = vpack.c.bf16 %v1653_v8, %v1653_v8  ;;  %v1733_v3 = vsub.s32 1, %v3971_v52  ;;  %v1730_v4 = vrot.slane %v1725_v2, %v3974_v53  ;;  %v3330_v52 = vld [vmem:[%s4410_s12] sm:$0xff]  }
 0x709   :  { %v1656_v14 = vsel %vm825_vm1, %v1646_v6, %v1650_v9  ;;  %v4222_v15 = vsel %vm825_vm1, %v1645_v7, %v1649_v10  ;;  %v3684_v53 = vmov 0.0  }
 0x70a   :  { %2089 = vmatprep.mubr.bf16.mxu1 %v1722_v11  ;;  %v1724_v16 = vpack.c.bf16 %v1656_v14, %v1656_v14  ;;  %v1723_v36 = vpack.c.bf16 %v4222_v15, %v4222_v15  ;;  %v1734_v6 = vrot.slane %v1725_v2, %v1733_v3  ;;  %2932 = vmatprep.subr.bf16.mxu0 %v3684_v53  ;;  %v3331_v15 = vld [vmem:[%s4410_s12 + $0x8] sm:$0xff]  }
 0x70b   :  { %2090 = vmatmul.mubr.bf16.vlgmr.msra.gmra.mrb[4].mxu1 %v1721_v13  ;;  %2946 = vmatprep.mubr.msk.bf16.mxu0 %vm3685_vm5, %v3684_v53 }
 0x70c   :  { %2099 = vmatpush1.bf16.msra.mxu1 %v3266_v12  ;;  %2130 = vmatprep.mubr.bf16.mxu1 %v1724_v16  ;;  %v3332_v16 = vld [vmem:[%s4410_s12 + $0x10] sm:$0xff]  }
 0x70d   :  { %2100 = vmatprep.subr.bf16.mxu1 %v3271_v0 }
 0x710   :  { %2101 = vmatpush1.bf16.msra.mxu1 %v3269_v17  ;;  %v3333_v17 = vld [vmem:[%s4410_s12 + $0x18] sm:$0xff]  }
 0x711   :  { %2102 = vmatprep.subr.bf16.mxu1 %v3274_v18  ;;  %v3334_v18 = vld [vmem:[%s4410_s12 + $0x20] sm:$0xff]  }
 0x714   :  { %2103 = vmatpush1.bf16.msra.mxu1 %v3272_v19  ;;  %v3335_v19 = vld [vmem:[%s4410_s12 + $0x28] sm:$0xff]  }
 0x715   :  { %2104 = vmatprep.subr.bf16.mxu1 %v3277_v20  ;;  %v3336_v20 = vld [vmem:[%s4410_s12 + $0x30] sm:$0xff]  }
 0x718   :  { %2105 = vmatpush1.bf16.msra.mxu1 %v3275_v61  ;;  %v3337_v61 = vld [vmem:[%s4410_s12 + $0x38] sm:$0xff]  }
 0x719   :  { %2106 = vmatprep.subr.bf16.mxu1 %v3280_v21 }
 0x71c   :  { %2107 = vmatpush1.bf16.msra.mxu1 %v3278_v62 }
 0x71d   :  { %2108 = vmatprep.subr.bf16.mxu1 %v3283_v22 }
 0x720   :  { %2109 = vmatpush1.bf16.msra.mxu1 %v3281_v57 }
 0x721   :  { %2110 = vmatprep.subr.bf16.mxu1 %v3286_v58 }
 0x724   :  { %2111 = vmatpush1.bf16.msra.mxu1 %v3284_v63 }
 0x725   :  { %2112 = vmatprep.subr.bf16.mxu1 %v3289_v1 }
 0x728   :  { %2113 = vmatpush1.bf16.msra.mxu1 %v3287_v59 }
 0x729   :  { %2114 = vmatprep.subr.bf16.mxu1 %v3292_v60 }
 0x72c   :  { %2115 = vmatpush1.bf16.msra.mxu1 %v3290_v23 }
 0x72d   :  { %2116 = vmatprep.subr.bf16.mxu1 %v3295_v24 }
 0x730   :  { %2117 = vmatpush1.bf16.msra.mxu1 %v3293_v25 }
 0x731   :  { %2118 = vmatprep.subr.bf16.mxu1 %v3298_v26 }
 0x734   :  { %2119 = vmatpush1.bf16.msra.mxu1 %v3296_v27 }
 0x735   :  { %2120 = vmatprep.subr.bf16.mxu1 %v3301_v28 }
 0x738   :  { %2121 = vmatpush1.bf16.msra.mxu1 %v3299_v29 }
 0x739   :  { %2122 = vmatprep.subr.bf16.mxu1 %v3304_v30 }
 0x73c   :  { %2123 = vmatpush1.bf16.msra.mxu1 %v3302_v32 }
 0x73d   :  { %2124 = vmatprep.subr.bf16.mxu1 %v3307_v34 }
 0x740   :  { %2125 = vmatpush1.bf16.msra.mxu1 %v3305_v35 }
 0x741   :  { %2126 = vmatprep.subr.bf16.mxu1 %v3310_v37 }
 0x744   :  { %2127 = vmatpush1.bf16.msra.mxu1 %v3308_v38 }
 0x745   :  { %2128 = vmatprep.subr.bf16.mxu1 %v3313_v31 }
 0x748   :  { %2129 = vmatpush1.bf16.msra.mxu1 %v3311_v41 }
 0x749   :  { %2873 = vmatprep.subr.bf16.mxu1 %v3314_v42 }
 0x74b   :  { %2131 = vmatmul.mubr.bf16.vlgmr.msra.gmra.mrb[4].mxu1 %v1723_v36 }
 0x74c   :  { %2874 = vmatpush3.bf16.msra.mxu1 %v3315_v43  ;;  %v2852_v43 = vld [vmem:[#allocation14] ss:$0 sm:$0xff] }
 0x74d   :  { %2875 = vmatprep.subr.bf16.mxu1 %v3316_v33  ;;  %v2853_v33 = vld [vmem:[#allocation16] ss:$0 sm:$0xff] }
 0x750   :  { %2876 = vmatpush3.bf16.msra.mxu1 %v3317_v44 }
 0x751   :  { %2877 = vmatprep.subr.bf16.mxu1 %v3318_v45 }
 0x754   :  { %2878 = vmatpush3.bf16.msra.mxu1 %v3319_v46 }
 0x755   :  { %2879 = vmatprep.subr.bf16.mxu1 %v3320_v39 }
 0x758   :  { %2880 = vmatpush3.bf16.msra.mxu1 %v3321_v40 }
 0x759   :  { %2881 = vmatprep.subr.bf16.mxu1 %v3322_v47  ;;  %v3338_v47 = vld [vmem:[%s4413_s15] sm:$0xff]  }
 0x75a   :  { %2933 = vmatpush3.bf16.msra.mxu0 %v3338_v47 }
 0x75b   :  { %2934 = vmatprep.subr.bf16.mxu0 %v3684_v53 }
 0x75c   :  { %2882 = vmatpush3.bf16.msra.mxu1 %v3323_v48  ;;  %v3339_v48 = vld [vmem:[%s4413_s15 + $0x8] sm:$0xff]  }
 0x75d   :  { %2883 = vmatprep.subr.bf16.mxu1 %v3324_v49  ;;  %v3340_v49 = vld [vmem:[%s4413_s15 + $0x10] sm:$0xff]  }
 0x75e   :  { %2935 = vmatpush3.bf16.msra.mxu0 %v3339_v48 }
 0x75f   :  { %2936 = vmatprep.subr.bf16.mxu0 %v3684_v53 }
 0x760   :  { %2884 = vmatpush3.bf16.msra.mxu1 %v3325_v50  ;;  %v3341_v50 = vld [vmem:[%s4413_s15 + $0x18] sm:$0xff]  }
 0x761   :  { %2885 = vmatprep.subr.bf16.mxu1 %v3326_v51  ;;  %v3342_v51 = vld [vmem:[%s4413_s15 + $0x20] sm:$0xff]  }
 0x762   :  { %2937 = vmatpush3.bf16.msra.mxu0 %v3340_v49 }
 0x763   :  { %2938 = vmatprep.subr.bf16.mxu0 %v3684_v53 }
 0x764   :  { %2886 = vmatpush3.bf16.msra.mxu1 %v3327_v54  ;;  %v3343_v54 = vld [vmem:[%s4413_s15 + $0x28] sm:$0xff]  }
 0x765   :  { %2887 = vmatprep.subr.bf16.mxu1 %v3328_v55  ;;  %v3344_v55 = vld [vmem:[%s4413_s15 + $0x30] ss:$0 sps:$4 sm:$0x33]   ;;  %s3686_s15 = smov [#allocation22]  }
 0x766   :  { %2939 = vmatpush3.bf16.msra.mxu0 %v3341_v50  ;;  %s2624_s20 = sshll.u32 %s3686_s15, 4  ;;  %s2625_s20 = int_to_ptr.vmem [resolvable:$true] %s2624_s20 }
 0x767   :  { %2940 = vmatprep.subr.bf16.mxu0 %v3684_v53  ;;  %s3625_s5 = scalar_lea.vmem %s2625_s20, 32  ;;  %p3630_p13 = scmp.lt.s32.totalorder %s2625_s20, %s2625_s20 }
 0x768   :  { %2888 = vmatpush3.bf16.msra.mxu1 %v3329_v56  ;;  %v2563_v56 = vsel %vm828_vm2, %v3344_v55, 0  ;;  %p3626_p12 = scmp.ne.s32.totalorder %s2625_s20, %s3625_s5  ;;  %p3631_p0 = scmp.lt.s32.totalorder %s3625_s5, %s3625_s5 }
 0x769   :  { %2912 = vmatprep.subr.bf16.mxu1 %v3684_v53 }
 0x76a   :  { %2941 = vmatpush3.bf16.msra.mxu0 %v3342_v51  ;;  %p3632_p1 = por %p3631_p0, %p3630_p13 }
 0x76b   :  { %2942 = vmatprep.subr.bf16.mxu0 %v3684_v53 }
 0x76c   :  { %p3633_p2 = pnand %p3632_p1, %p3626_p12 }
 0x76e   :  { %2943 = vmatpush3.bf16.msra.mxu0 %v3343_v54 }
 0x76f   :  { %2944 = vmatprep.subr.bf16.mxu0 %v3684_v53 }
 0x772   :  { %2945 = vmatpush3.bf16.msra.mxu0 %v2563_v56 }
 0x81e   :  { %v2132_v7 = vpop.f32.mrb[4].mxu1 }
 0x81f   :  { %v2950_v5 = vadd.f32 %v2132_v7, %v1730_v4  ;;  %v2134_v8 = vpop.f32.mrb[5].mxu1 }
 0x820   :  { %v2951_v9 = vadd.f32 %v2134_v8, %v1734_v6  ;;  %v2136_v10 = vpop.f32.mrb[6].mxu1 }
 0x821   :  { %3349 = vtanh.f32 %v2950_v5  ;;  %v2137_v11 = vpop.f32.mrb[7].mxu1 }
 0x822   :  { %3351 = vtanh.f32 %v2951_v9 }
 0x82b   :  { %v3350_v12 = vpop.eup %3349 }
 0x82c   :  { %v3352_v13 = vpop.eup %3351  ;;  %v2173_v0 = vpack.c.bf16 %v3350_v12, %v3350_v12 }
 0x82d   :  { %v2174_v14 = vpack.c.bf16 %v3352_v13, %v3352_v13 }
 0x82f   :  { %2303 = vmatprep.mubr.bf16.mxu1 %v2174_v14 }
 0x830   :  { %2304 = vmatmul.mubr.bf16.vlgmr.msra.gmra.mrb[8].mxu1 %v2173_v0 }
 0x831   :  { %2913 = vmatpush3.bf16.msra.mxu1 %v3330_v52  ;;  %2928 = vmatprep.mubr.msk.bf16.mxu1 %vm3685_vm5, %v3684_v53 }
 0x832   :  { %2914 = vmatprep.subr.bf16.mxu1 %v3684_v53 }
 0x835   :  { %2915 = vmatpush3.bf16.msra.mxu1 %v3331_v15 }
 0x836   :  { %2916 = vmatprep.subr.bf16.mxu1 %v3684_v53 }
 0x839   :  { %2917 = vmatpush3.bf16.msra.mxu1 %v3332_v16 }
 0x83a   :  { %2918 = vmatprep.subr.bf16.mxu1 %v3684_v53 }
 0x83d   :  { %2919 = vmatpush3.bf16.msra.mxu1 %v3333_v17 }
 0x83e   :  { %2920 = vmatprep.subr.bf16.mxu1 %v3684_v53 }
 0x841   :  { %2921 = vmatpush3.bf16.msra.mxu1 %v3334_v18 }
 0x842   :  { %2922 = vmatprep.subr.bf16.mxu1 %v3684_v53 }
 0x845   :  { %2923 = vmatpush3.bf16.msra.mxu1 %v3335_v19 }
 0x846   :  { %2924 = vmatprep.subr.bf16.mxu1 %v3684_v53 }
 0x849   :  { %2925 = vmatpush3.bf16.msra.mxu1 %v3336_v20 }
 0x84a   :  { %2926 = vmatprep.subr.bf16.mxu1 %v3684_v53 }
 0x84d   :  { %2927 = vmatpush3.bf16.msra.mxu1 %v3337_v61 }
 0x903   :  { %v2889_v21 = vpop.f32.mrb[8].mxu1 }
 0x904   :  { %v2890_v62 = vpop.f32.mrb[9].mxu1 }
 0x905   :  { %v2891_v22 = vadd.f32 %v2890_v62, %v2889_v21  ;;  %v2892_v57 = vpop.f32.mrb[10].mxu1  ;;  %v2862_v62 = vld [vmem:[#allocation17] ss:$0 sm:$0xff] }
 0x906   :  { %v2893_v58 = vpop.f32.mrb[11].mxu1  ;;  %v2863_v57 = vld [vmem:[#allocation19] ss:$0 sm:$0xff] }
 0x907   :  { %v2313_v63 = vsel %vm828_vm2, %v2891_v22, 0.0 }
 0x908   :  { %v2314_v1 = vrot.slane %v2313_v63, 4 }
 0x90a   :  { %v2315_v59 = vadd.f32 %v2314_v1, %v2313_v63 }
 0x90c   :  { %v2316_v60 = vrot.slane %v2315_v59, 2 }
 0x90e   :  { %v2317_v23 = vadd.f32 %v2316_v60, %v2315_v59 }
 0x910   :  { %v2318_v24 = vrot.slane %v2317_v23, 1 }
 0x912   :  { %v2319_v25 = vadd.f32 %v2318_v24, %v2317_v23  ;;  %v2864_v23 = vld [vmem:[#allocation20] ss:$0 sm:$0xff] }
 0x914   :  { %v2321_v26 = vmul.f32 0.5, %v2319_v25 }
 0x916   :  { %v2322_v27 = vsub.f32 %v2891_v22, %v2321_v26 }
 0x918   :  { %v2323_v28 = vmul.f32 %v2322_v27, %v2322_v27 }
 0x91a   :  { %v2324_v29 = vsel %vm828_vm2, %v2323_v28, 0.0 }
 0x91b   :  { %v2325_v30 = vrot.slane %v2324_v29, 4 }
 0x91d   :  { %v2326_v32 = vadd.f32 %v2325_v30, %v2324_v29 }
 0x91f   :  { %v2327_v34 = vrot.slane %v2326_v32, 2 }
 0x921   :  { %v2328_v35 = vadd.f32 %v2327_v34, %v2326_v32 }
 0x923   :  { %v2329_v37 = vrot.slane %v2328_v35, 1 }
 0x925   :  { %v2330_v38 = vadd.f32 %v2329_v37, %v2328_v35 }
 0x927   :  { %v2331_v31 = vmul.f32 0.5, %v2330_v38 }
 0x929   :  { %v2332_v41 = vadd.f32 1e-05, %v2331_v31 }
 0x92b   :  { %3353 = vrsqrt.f32 %v2332_v41 }
 0x935   :  { %v3354_v42 = vpop.eup %3353 }
 0x936   :  { %v2334_v36 = vmul.f32 %v3354_v42, %v2322_v27 }
 0x938   :  { %v2341_v44 = vmul.f32 %v2852_v43, %v2334_v36 }
 0x93a   :  { %v2348_v45 = vadd.f32 %v2853_v33, %v2341_v44 }
 0x93c   :  { %vm2349_vm6 = vcmp.ge.f32.partialorder %v2348_v45, 0.0  ;;  %v2350_v46 = vmul.f32 0.01, %v2348_v45 }
 0x93e   :  { %v2351_v39 = vsel %vm2349_vm6, %v2348_v45, %v2350_v46 }
 0x93f   :  { %v2368_v40 = vpack.c.bf16 %v2351_v39, %v2351_v39 }
 0x941   :  { %2929 = vmatmul.mubr.bf16.vlgmr.msra.gmra.mrb[12].mxu1 %v2368_v40 }
 0xa14   :  { %v2451_v2 = vpop.f32.mrb[12].mxu1 }
 0xa15   :  { %v2460_v3 = vsel %vm2459_vm7, %v2451_v2, 0.0  ;;  %v2930_v4 = vpop.f32.mrb[13].mxu1 }
 0xa16   :  { %v2461_v6 = vrot.slane %v2460_v3, 4  ;;  %v2454_v7 = vpop.f32.mrb[14].mxu1 }
 0xa17   :  { %v2931_v5 = vpop.f32.mrb[15].mxu1 }
 0xa18   :  { %v2462_v8 = vadd.f32 %v2461_v6, %v2460_v3 }
 0xa1a   :  { %v2463_v9 = vrot.slane %v2462_v8, 2 }
 0xa1c   :  { %v2464_v10 = vadd.f32 %v2463_v9, %v2462_v8 }
 0xa1e   :  { %v2465_v11 = vrot.slane %v2464_v10, 1 }
 0xa20   :  { %v2466_v12 = vadd.f32 %v2465_v11, %v2464_v10 }
 0xa22   :  { %v2467_v13 = vmul.f32 0.5, %v2466_v12 }
 0xa24   :  { %v2468_v14 = vsub.f32 %v2451_v2, %v2467_v13 }
 0xa26   :  { %v2469_v0 = vmul.f32 %v2468_v14, %v2468_v14 }
 0xa28   :  { %v2470_v52 = vsel %vm2459_vm7, %v2469_v0, 0.0 }
 0xa29   :  { %v2471_v53 = vrot.slane %v2470_v52, 4 }
 0xa2b   :  { %v2472_v15 = vadd.f32 %v2471_v53, %v2470_v52 }
 0xa2d   :  { %v2473_v16 = vrot.slane %v2472_v15, 2 }
 0xa2f   :  { %v2474_v17 = vadd.f32 %v2473_v16, %v2472_v15 }
 0xa31   :  { %v2475_v18 = vrot.slane %v2474_v17, 1 }
 0xa33   :  { %v2476_v19 = vadd.f32 %v2475_v18, %v2474_v17 }
 0xa35   :  { %v2477_v20 = vmul.f32 0.5, %v2476_v19 }
 0xa37   :  { %v2478_v61 = vadd.f32 1e-05, %v2477_v20 }
 0xa39   :  { %3355 = vrsqrt.f32 %v2478_v61 }
 0xa43   :  { %v3356_v21 = vpop.eup %3355 }
 0xa44   :  { %v2480_v22 = vmul.f32 %v3356_v21, %v2468_v14 }
 0xa46   :  { %v2487_v58 = vmul.f32 %v2862_v62, %v2480_v22 }
 0xa48   :  { %v2494_v63 = vadd.f32 %v2863_v57, %v2487_v58 }
 0xa4a   :  { %vm2495_vm8 = vcmp.ge.f32.partialorder %v2494_v63, 0.0  ;;  %v2496_v1 = vmul.f32 0.01, %v2494_v63 }
 0xa4c   :  { %v2497_v59 = vsel %vm2495_vm8, %v2494_v63, %v2496_v1 }
 0xa4d   :  { %v2511_v60 = vpack.c.bf16 %v2497_v59, %v2497_v59 }
 0xa4f   :  { %2947 = vmatmul.mubr.msk.bf16.vlgmr.msra.gmra.mrb[8].mxu0 %vm2558_vm9, %v2511_v60 }
 0xb22   :  { %v2599_v24 = vpop.f32.mrb[8].mxu0 }
 0xb23   :  { %v2600_v25 = vadd.f32 %v2864_v23, %v2599_v24  ;;  %v2948_v26 = vpop.f32.mrb[9].mxu0 }
 0xb24   :  { %v2602_v27 = vpop.f32.mrb[10].mxu0 }
 0xb25   :  { %v2949_v28 = vpop.f32.mrb[11].mxu0  ;;  %v2606_v29 = vsel %vm2605_vm10, %v2600_v25, -inf }
 0xb26   :  { %2607 = vmax.xlane.f32.xlu1 %v2606_v29 }
 0xbb3   :  { %v2608_v30 = vpop.xlane.xlu1 %2607 }
 0xbb4   :  { %v2609_v32 = vsub.f32 %v2600_v25, %v2608_v30 }
 0xbb6   :  { %v2610_v34 = vmul.f32 1.442695, %v2609_v32 }
 0xbb8   :  { %3357 = vpow2.f32 %v2610_v34 }
 0xbc2   :  { %v3358_v35 = vpop.eup %3357 }
 0xbc3   :  { %v2612_v37 = vsel %vm2605_vm10, %v3358_v35, 0.0 }
 0xbc4   :  { %2613 = vadd.xlane.f32.xlu0 %v2612_v37 }
 0xc51   :  { %v2614_v38 = vpop.xlane.xlu0 %2613 }
 0xc52   :  { %3359 = vrcp.f32 %v2614_v38 }
 0xc5c   :  { %v3360_v31 = vpop.eup %3359 }
 0xc5d   :  { %v2616_v41 = vmul.f32 %v3360_v31, %v3358_v35 }
 0xc5f   :  { %2617 = vst.msk [vmem:[#allocation22] sm:$0x3] %vm2605_vm10, %v2616_v41 }
 0xc60   :  { %3636 = shalt.err (!%p3633_p2)
}
 0xc61   :  { %s3637_s21 = scalar_lea.hbm %s4415_s17, 32 }
 0xc62   :  { %p3638_p3 = scmp.ne.s32.totalorder %s4415_s17, %s3637_s21  ;;  %p3641_p4 = scmp.lt.u32.totalorder %s3637_s21, %s4415_s17 }
 0xc64   :  { %p3643_p5 = pnand %p3641_p4, %p3638_p3 }
 0xc66   :  { %3646 = shalt.err (!%p3643_p5)
}
 0xc67   :  { %2627 = dma.vmem_to_hbm [thread:$0]  %s2625_s20, 32, %s4415_s17, [#allocation4]  }
 0xc68   :  { %3661 = dma.done.wait [#allocation4], 32  }
 0xc69   :  { %3662 = vsyncadd [#allocation4], 4294967264 }
 0xc6a   :  { %2631 = vsyncpa [#allocation3], 1 }
 0xc6b   :  { %2632 = vsyncpa [#allocation6], 1 }
 0xc6c   :  { %2633 = vsyncpa [#allocation9], 1 }
 0xc6d   :  { %2634 = vsyncpa [#allocation12], 1 }
 0xc6e   :  { %2635 = vsyncpa [#allocation15], 1 }
 0xc6f   :  { %2636 = vsyncpa [#allocation18], 1 }
 0xc70   :  { %2637 = vsyncpa [#allocation21], 1 }
 0xc71   :  { %2638 = vsyncpa [#allocation4], 1 }

</bundles_post_ra>
